<compile_context>
chip_gen: v7x
topology: tpu7x:2x2x1
jax: 0.10.0
libtpu: 0.0.40
codegen_flags: <defaults>
</compile_context>

<pallas_src>
import jax
import jax.numpy as jnp
from jax.experimental import pallas as pl
from jax.experimental.pallas import tpu as pltpu


def _conv_out(size, stride):
    return (size + 2 - 3) // stride + 1


def _full_spec(shape):
    zeros = (0,) * len(shape)
    return pl.BlockSpec(shape, lambda i, _z=zeros: _z)


def _vmem_budget():
    """(budget for picking T, scoped vmem limit), generation-aware."""
    cap = 64 << 20                      # conservative default: v7x per-core VMEM
    try:
        info = pltpu.get_tpu_info()
        cap = int(getattr(info, "vmem_capacity_bytes", cap) or cap)
    except Exception:
        pass
    return int(cap * 0.6), int(cap * 0.75)


def _choose_batch(nd, per_t_bytes, fixed_bytes, budget_bytes, min_steps=4):
    """Largest T whose working set fits the budget, keeping >= min_steps grid steps
    (>= 2 per v7x TensorCore) whenever nd allows it."""
    avail = max(budget_bytes - fixed_bytes, per_t_bytes)
    t_mem = max(1, int(avail // max(per_t_bytes, 1)))
    t_steps = max(1, nd // min_steps) if nd >= min_steps else 1
    return max(1, min(nd, t_mem, t_steps))


# --------------------------------------------------------------------------
# Packed (lane-dense) kernel: blocks are (T, H, W*C), channels innermost.
# Handles stride 1 and stride 2 (stride-1 depthwise + decimation).
# --------------------------------------------------------------------------
def _make_flat_kernel(T, H, W, Cin, Chid, Cout, stride, use_res, expand):
    WCi, WCh = W * Cin, W * Chid
    Hout, Wout = _conv_out(H, stride), _conv_out(W, stride)
    WoCo = Wout * Cout

    def kernel(x_ref, w1_ref, b1_ref, wd_ref, b2_ref, w3_ref, b3_ref, o_ref):
        x = x_ref[...].astype(jnp.float32)                        # (T, H, W*Cin)

        # ---- expand: 1x1x1 conv as one block-diagonal matmul + folded BN + ReLU6 ----
        if expand:
            y1 = jnp.dot(x.reshape(T * H, WCi), w1_ref[...],
                         preferred_element_type=jnp.float32)      # (T*H, W*Chid)
            y1 = jnp.clip(y1 + b1_ref[...], 0.0, 6.0).reshape(T, H, WCh)
        else:
            y1 = x                                                # Chid == Cin

        # ---- depthwise (1,3,3) conv, pad 1, folded BN + ReLU6 ----
        # H taps: circular sublane rolls (+/-1) with the wrapped edge rows killed
        #         by a hoisted row mask (no padded buffer, no unaligned slices).
        # W taps: circular lane rolls (+/-Chid); wrapped edge columns are killed
        #         by zeros folded into the tiled weights in the wrapper.
        row = jax.lax.broadcasted_iota(jnp.int32, (T, H, WCh), 1)
        wdt = wd_ref[...]                                         # (3, 3, W*Chid)
        acc = jnp.zeros((T, H, WCh), jnp.float32)
        for kh in range(3):
            if kh == 0:
                slab = jnp.where(row >= 1,
                                 pltpu.roll(y1, shift=1, axis=1), 0.0)
            elif kh == 1:
                slab = y1
            else:
                slab = jnp.where(row <= H - 2,
                                 pltpu.roll(y1, shift=H - 1, axis=1), 0.0)
            for kw, shift in enumerate((Chid, 0, WCh - Chid)):
                patch = pltpu.roll(slab, shift=shift, axis=2) if shift else slab
                acc = acc + patch * wdt[kh, kw]
        y2 = jnp.clip(acc + b2_ref[...], 0.0, 6.0)                # (T, H, W*Chid)

        # ---- spatial stride: decimate H rows; W decimation is folded into the
        #      zero-structured pointwise weights (no lane compaction needed). ----
        if stride == 2:
            y2 = jax.lax.slice(y2, (0, 0, 0), (T, H, WCh), (1, 2, 1))

        # ---- pointwise 1x1x1 conv (block-diagonal matmul) + folded BN ----
        y3 = jnp.dot(y2.reshape(T * Hout, WCh), w3_ref[...],
                     preferred_element_type=jnp.float32)          # (T*Hout, Wout*Cout)
        y3 = (y3 + b3_ref[...]).reshape(T, Hout, WoCo)

        # ---- residual (stride == 1 and Cin == Cout) ----
        if use_res:
            y3 = y3 + x

        o_ref[...] = y3.astype(o_ref.dtype)

    return kernel


# --------------------------------------------------------------------------
# General fallback kernel (channels already lane-dense, C >= 128, or kron too
# big).  Blocks are (T, H, W, C).  Depthwise = 9 contiguous taps at stride 1,
# then a single strided decimation for stride 2.
# --------------------------------------------------------------------------
def _make_general_kernel(T, H, W, Cin, Chid, Cout, stride, use_res, expand):
    Hout, Wout = _conv_out(H, stride), _conv_out(W, stride)

    def kernel(x_ref, w1_ref, b1_ref, wd_ref, b2_ref, w3_ref, b3_ref, o_ref):
        x = x_ref[...].astype(jnp.float32)                        # (T, H, W, Cin)

        if expand:
            y1 = jnp.dot(x.reshape(T * H * W, Cin), w1_ref[...],
                         preferred_element_type=jnp.float32)
            y1 = jnp.clip(y1 + b1_ref[...], 0.0, 6.0).reshape(T, H, W, Chid)
        else:
            y1 = x

        zrow = jnp.zeros((T, 1, W, Chid), jnp.float32)
        y1p = jnp.concatenate([zrow, y1, zrow], axis=1)           # (T, H+2, W, Chid)
        zcol = jnp.zeros((T, H + 2, 1, Chid), jnp.float32)
        y1p = jnp.concatenate([zcol, y1p, zcol], axis=2)          # (T, H+2, W+2, Chid)

        wd = wd_ref[...]                                          # (3, 3, Chid)
        acc = jnp.zeros((T, H, W, Chid), jnp.float32)
        for kh in range(3):
            for kw in range(3):
                patch = jax.lax.slice(y1p, (0, kh, kw, 0),
                                      (T, kh + H, kw + W, Chid))  # contiguous
                acc = acc + patch * wd[kh, kw]
        y2 = jnp.clip(acc + b2_ref[0], 0.0, 6.0)
        if stride == 2:
            y2 = jax.lax.slice(y2, (0, 0, 0, 0), (T, H, W, Chid), (1, 2, 2, 1))

        y3 = jnp.dot(y2.reshape(T * Hout * Wout, Chid), w3_ref[...],
                     preferred_element_type=jnp.float32)
        y3 = (y3 + b3_ref[...]).reshape(T, Hout, Wout, Cout)

        if use_res:
            y3 = y3 + x

        o_ref[...] = y3.astype(o_ref.dtype)

    return kernel


# --------------------------------------------------------------------------
# Channels-last core (no HBM transposes): x_ndhwc is (N, D, H, W, Cin).
# --------------------------------------------------------------------------
def inverted_residual_packed(x_ndhwc, w1, b1, wd, b2, w3, b3, *, stride, expand,
                             use_res):
    """Weights already have eval-mode BN folded in:
       w1: (Cin, Chid)   b1: (1, Chid)
       wd: (3, 3, Chid)  b2: (1, Chid)
       w3: (Chid, Cout)  b3: (1, Cout)
    """
    N, D, H, W, Cin = x_ndhwc.shape
    Chid, Cout = w3.shape
    assert stride in (1, 2)
    if use_res:
        assert stride == 1 and Cin == Cout, "residual needs stride==1 and inp==oup"
    if not expand:
        assert Chid == Cin
        if w1 is None:
            w1 = jnp.eye(Cin, dtype=jnp.float32)
            b1 = jnp.zeros((1, Cin), jnp.float32)

    ND = N * D
    Hout, Wout = _conv_out(H, stride), _conv_out(W, stride)
    WCi, WCh, WoCo = W * Cin, W * Chid, Wout * Cout
    f32 = 4

    budget, vmem_limit = _vmem_budget()

    kron_bytes = f32 * (WCi * WCh + WCh * WoCo)
    use_flat = (max(Cin, Chid, Cout) < 128) and (kron_bytes <= (8 << 20))

    if use_flat:
        per_t = f32 * (2 * H * WCi + 2 * Hout * WoCo + 8 * H * WCh + 2 * H * W * Cout)
        fixed = 2 * (kron_bytes + f32 * (11 * WCh + WoCo))
    else:
        per_t = f32 * (2 * H * W * Cin + 2 * Hout * Wout * Cout
                       + (H + 2) * (W + 2) * Chid + 4 * H * W * Chid
                       + Hout * Wout * (Chid + Cout))
        fixed = 2 * f32 * (Cin * Chid + Chid * Cout + 11 * Chid + Cout)

    # TODO(synk): H-tiling grid axis (1-row halo) when even T == 1 overshoots.
    T = _choose_batch(ND, per_t, fixed, budget)
    steps = (ND + T - 1) // T
    nd_pad = steps * T

    params = pltpu.CompilerParams(dimension_semantics=("parallel",),
                                  vmem_limit_bytes=vmem_limit)

    if use_flat:
        # (N,D,H,W,C) -> (N*D, H, W*C): contiguous merges, no data movement.
        x_slices = x_ndhwc.reshape(ND, H, WCi)
        if nd_pad != ND:
            x_slices = jnp.pad(x_slices, ((0, nd_pad - ND), (0, 0), (0, 0)))

        # Block-diagonal / tiled weights built once on the host side.
        eye_w = jnp.eye(W, dtype=jnp.float32)
        w1f = jnp.kron(eye_w, w1)                           # (W*Cin,  W*Chid)
        b1f = jnp.tile(b1, (1, W))                          # (1, W*Chid)
        wdt = jnp.tile(wd, (1, 1, W))                       # (3, 3, W*Chid)
        col = jnp.arange(WCh) // Chid                       # spatial column per lane
        wdt = wdt.at[:, 0, :].multiply((col >= 1).astype(wd.dtype))     # kw=0 edge
        wdt = wdt.at[:, 2, :].multiply((col <= W - 2).astype(wd.dtype)) # kw=2 edge
        b2f = jnp.tile(b2, (1, W))                          # (1, W*Chid)
        # Pointwise weights also perform the W decimation for stride == 2.
        sel = jnp.zeros((W, Wout), jnp.float32)
        sel = sel.at[jnp.arange(Wout) * stride, jnp.arange(Wout)].set(1.0)
        w3f = jnp.kron(sel, w3)                             # (W*Chid, Wout*Cout)
        b3f = jnp.tile(b3, (1, Wout))                       # (1, Wout*Cout)

        kernel = _make_flat_kernel(T, H, W, Cin, Chid, Cout, stride, use_res, expand)
        out = pl.pallas_call(
            kernel,
            out_shape=jax.ShapeDtypeStruct((nd_pad, Hout, WoCo), x_ndhwc.dtype),
            grid_spec=pltpu.PrefetchScalarGridSpec(
                num_scalar_prefetch=0,
                grid=(steps,),
                in_specs=[
                    pl.BlockSpec((T, H, WCi), lambda i: (i, 0, 0)),
                    _full_spec((WCi, WCh)),
                    _full_spec((1, WCh)),
                    _full_spec((3, 3, WCh)),
                    _full_spec((1, WCh)),
                    _full_spec((WCh, WoCo)),
                    _full_spec((1, WoCo)),
                ],
                out_specs=pl.BlockSpec((T, Hout, WoCo), lambda i: (i, 0, 0)),
            ),
            compiler_params=params,
        )(x_slices, w1f, b1f, wdt, b2f, w3f, b3f)
        out = out[:ND].reshape(N, D, Hout, Wout, Cout)
    else:
        x_slices = x_ndhwc.reshape(ND, H, W, Cin)
        if nd_pad != ND:
            x_slices = jnp.pad(x_slices, ((0, nd_pad - ND), (0, 0), (0, 0), (0, 0)))
        kernel = _make_general_kernel(T, H, W, Cin, Chid, Cout, stride, use_res,
                                      expand)
        out = pl.pallas_call(
            kernel,
            out_shape=jax.ShapeDtypeStruct((nd_pad, Hout, Wout, Cout), x_ndhwc.dtype),
            grid_spec=pltpu.PrefetchScalarGridSpec(
                num_scalar_prefetch=0,
                grid=(steps,),
                in_specs=[
                    pl.BlockSpec((T, H, W, Cin), lambda i: (i, 0, 0, 0)),
                    _full_spec((Cin, Chid)),
                    _full_spec((1, Chid)),
                    _full_spec((3, 3, Chid)),
                    _full_spec((1, Chid)),
                    _full_spec((Chid, Cout)),
                    _full_spec((1, Cout)),
                ],
                out_specs=pl.BlockSpec((T, Hout, Wout, Cout),
                                       lambda i: (i, 0, 0, 0)),
            ),
            compiler_params=params,
        )(x_slices, w1, b1, wd, b2, w3, b3)
        out = out[:ND].reshape(N, D, Hout, Wout, Cout)

    return out                                              # (N, D, Hout, Wout, Cout)


def inverted_residual_pallas(x_ncdhw, w1, b1, wd, b2, w3, b3, *, stride, expand,
                             use_res):
    """NCDHW entry point matching the PyTorch module layout."""
    # TODO(synk): if the surrounding model is channels-last end-to-end, call
    # inverted_residual_packed directly and drop these HBM-level transposes
    # (they roughly double HBM traffic for this memory-bound block).
    x_ndhwc = jnp.transpose(x_ncdhw, (0, 2, 3, 4, 1))
    out = inverted_residual_packed(x_ndhwc, w1, b1, wd, b2, w3, b3,
                                   stride=stride, expand=expand, use_res=use_res)
    return jnp.transpose(out, (0, 4, 1, 2, 3))


def _fold_bn(gamma, beta, mean, var, eps=1e-5):
    scale = gamma / jnp.sqrt(var + eps)
    bias = beta - mean * scale
    return scale, bias


def _ref_forward(x, w1, b1, wd, b2, w3, b3, *, stride, expand, use_res):
    """Pure-JAX reference (NCDHW), for correctness checking only."""
    N, Cin, D, H, W = x.shape
    Chid = w3.shape[0]
    if expand:
        y = jnp.einsum('ncdhw,co->nodhw', x, w1) + b1.reshape(1, -1, 1, 1, 1)
        y = jnp.clip(y, 0.0, 6.0)
    else:
        y = x
    y2d = jnp.transpose(y, (0, 2, 1, 3, 4)).reshape(N * D, Chid, H, W)
    k2d = jnp.transpose(wd, (2, 0, 1))[:, None, :, :]          # (Chid, 1, 3, 3)
    z2d = jax.lax.conv_general_dilated(
        y2d, k2d, window_strides=(stride, stride), padding=((1, 1), (1, 1)),
        feature_group_count=Chid,
        dimension_numbers=('NCHW', 'OIHW', 'NCHW'))
    Hout, Wout = z2d.shape[-2], z2d.shape[-1]
    z = jnp.transpose(z2d.reshape(N, D, Chid, Hout, Wout), (0, 2, 1, 3, 4))
    z = jnp.clip(z + b2.reshape(1, -1, 1, 1, 1), 0.0, 6.0)
    out = jnp.einsum('ncdhw,co->nodhw', z, w3) + b3.reshape(1, -1, 1, 1, 1)
    if use_res:
        out = out + x
    return out


if __name__ == "__main__":
    # Module config: InvertedResidual(inp=8, oup=8, stride=1, expand_ratio=2),
    # default net_version (plain bottleneck branch).
    inp, oup, stride, expand_ratio = 8, 8, 1, 2
    hidden = int(round(inp * expand_ratio))
    use_res = (stride == 1 and inp == oup)
    expand = (expand_ratio != 1)

    N, D, H, W = 2, 4, 16, 16

    key = jax.random.PRNGKey(0)
    ks = jax.random.split(key, 16)

    x = jax.random.normal(ks[0], (N, inp, D, H, W), dtype=jnp.float32)

    # Conv weights (PyTorch shapes), deterministic init.
    w_expand = 0.1 * jax.random.normal(ks[1], (hidden, inp), dtype=jnp.float32)
    w_dw = 0.1 * jax.random.normal(ks[2], (hidden, 3, 3), dtype=jnp.float32)
    w_pw = 0.1 * jax.random.normal(ks[3], (oup, hidden), dtype=jnp.float32)

    # BatchNorm params (eval-mode running stats), deterministic.
    def bn_params(k, c):
        k1, k2, k3, k4 = jax.random.split(k, 4)
        gamma = 1.0 + 0.1 * jax.random.normal(k1, (c,), dtype=jnp.float32)
        beta = 0.1 * jax.random.normal(k2, (c,), dtype=jnp.float32)
        mean = 0.1 * jax.random.normal(k3, (c,), dtype=jnp.float32)
        var = jnp.abs(jax.random.normal(k4, (c,), dtype=jnp.float32)) + 0.5
        return gamma, beta, mean, var

    s1, bb1 = _fold_bn(*bn_params(ks[4], hidden))
    s2, bb2 = _fold_bn(*bn_params(ks[5], hidden))
    s3, bb3 = _fold_bn(*bn_params(ks[6], oup))

    # Fold BN scales into conv weights; biases kept separately.
    w1 = (w_expand * s1[:, None]).T                          # (Cin, Chid)
    b1 = bb1.reshape(1, hidden)
    wd = jnp.transpose(w_dw * s2[:, None, None], (1, 2, 0))  # (3, 3, Chid)
    b2 = bb2.reshape(1, hidden)
    w3 = (w_pw * s3[:, None]).T                              # (Chid, Cout)
    b3 = bb3.reshape(1, oup)

    out = inverted_residual_pallas(
        x, w1, b1, wd, b2, w3, b3, stride=stride, expand=expand, use_res=use_res)
    out = jax.block_until_ready(out)

    ref = _ref_forward(
        x, w1, b1.reshape(-1), wd, b2.reshape(-1), w3, b3.reshape(-1),
        stride=stride, expand=expand, use_res=use_res)

    Hout = _conv_out(H, stride)
    Wout = _conv_out(W, stride)
    assert out.shape == (N, oup, D, Hout, Wout), out.shape
    assert jnp.allclose(out, ref, atol=1e-4, rtol=1e-4), float(
        jnp.max(jnp.abs(out - ref)))

    print("KERNEL_OK")
</pallas_src>

<mosaic_0001>
module attributes {stable_mosaic.version = 11 : i64} {
  func.func @kernel(%arg0: i32, %arg1: memref<2x16x128xf32, #tpu.memory_space<vmem>>, %arg2: memref<128x256xf32, #tpu.memory_space<vmem>>, %arg3: memref<1x256xf32, #tpu.memory_space<vmem>>, %arg4: memref<3x3x256xf32, #tpu.memory_space<vmem>>, %arg5: memref<1x256xf32, #tpu.memory_space<vmem>>, %arg6: memref<256x128xf32, #tpu.memory_space<vmem>>, %arg7: memref<1x128xf32, #tpu.memory_space<vmem>>, %arg8: memref<2x16x128xf32, #tpu.memory_space<vmem>>) attributes {dimension_semantics = [#tpu.dimension_semantics<parallel>], iteration_bounds = array<i64: 4>, scalar_prefetch = 0 : i64, scratch_operands = 0 : i64, tpu.core_type = #tpu.core_type<tc>, window_params = [{transform_indices = @transform_0, window_bounds = array<i64: 2, 16, 128>}, {pipeline_mode = #tpu.pipeline_mode<synchronous>, transform_indices = @transform_1, window_bounds = array<i64: 128, 256>}, {pipeline_mode = #tpu.pipeline_mode<synchronous>, transform_indices = @transform_2, window_bounds = array<i64: 1, 256>}, {pipeline_mode = #tpu.pipeline_mode<synchronous>, transform_indices = @transform_3, window_bounds = array<i64: 3, 3, 256>}, {pipeline_mode = #tpu.pipeline_mode<synchronous>, transform_indices = @transform_4, window_bounds = array<i64: 1, 256>}, {pipeline_mode = #tpu.pipeline_mode<synchronous>, transform_indices = @transform_5, window_bounds = array<i64: 256, 128>}, {pipeline_mode = #tpu.pipeline_mode<synchronous>, transform_indices = @transform_6, window_bounds = array<i64: 1, 128>}, {transform_indices = @transform_7, window_bounds = array<i64: 2, 16, 128>}]} {
    %c0 = arith.constant 0 : index
    %c0_0 = arith.constant 0 : index
    %c0_1 = arith.constant 0 : index
    %0 = vector.load %arg1[%c0, %c0_0, %c0_1] : memref<2x16x128xf32, #tpu.memory_space<vmem>>, vector<2x16x128xf32>
    %1 = vector.shape_cast %0 : vector<2x16x128xf32> to vector<32x128xf32>
    %c0_2 = arith.constant 0 : index
    %c0_3 = arith.constant 0 : index
    %2 = vector.load %arg2[%c0_2, %c0_3] : memref<128x256xf32, #tpu.memory_space<vmem>>, vector<128x256xf32>
    %cst = arith.constant dense<0.000000e+00> : vector<32x256xf32>
    %3 = tpu.matmul %1, %2, %cst {dimension_numbers = #tpu.dot_dimension_numbers<[1], [0], [0], [1], [0, 0, 1, 1], [], []>} : vector<32x128xf32>, vector<128x256xf32>, vector<32x256xf32> -> vector<32x256xf32>
    %c0_4 = arith.constant 0 : index
    %c0_5 = arith.constant 0 : index
    %4 = vector.load %arg3[%c0_4, %c0_5] : memref<1x256xf32, #tpu.memory_space<vmem>>, vector<1x256xf32>
    %5 = vector.broadcast %4 : vector<1x256xf32> to vector<32x256xf32>
    %6 = arith.addf %3, %5 : vector<32x256xf32>
    %cst_6 = arith.constant 0.000000e+00 : f32
    %cst_7 = arith.constant 6.000000e+00 : f32
    %7 = vector.broadcast %cst_6 : f32 to vector<32x256xf32>
    %8 = arith.maximumf %7, %6 : vector<32x256xf32>
    %9 = vector.broadcast %cst_7 : f32 to vector<32x256xf32>
    %10 = arith.minimumf %9, %8 : vector<32x256xf32>
    %11 = vector.shape_cast %10 : vector<32x256xf32> to vector<2x16x256xf32>
    %12 = tpu.iota {dimensions = array<i32: 1>} : vector<2x16x256xi32>
    %c0_8 = arith.constant 0 : index
    %c0_9 = arith.constant 0 : index
    %c0_10 = arith.constant 0 : index
    %13 = vector.load %arg4[%c0_8, %c0_9, %c0_10] : memref<3x3x256xf32, #tpu.memory_space<vmem>>, vector<3x3x256xf32>
    %cst_11 = arith.constant 0.000000e+00 : f32
    %14 = vector.broadcast %cst_11 : f32 to vector<2x16x256xf32>
    %c1_i32 = arith.constant 1 : i32
    %15 = vector.broadcast %c1_i32 : i32 to vector<2x16x256xi32>
    %16 = arith.cmpi sge, %12, %15 : vector<2x16x256xi32>
    %c1_i32_12 = arith.constant 1 : i32
    %17 = tpu.dynamic_rotate %11 by %c1_i32_12 dim 1 : vector<2x16x256xf32>, i32 -> vector<2x16x256xf32>
    %cst_13 = arith.constant 0.000000e+00 : f32
    %18 = vector.broadcast %cst_13 : f32 to vector<2x16x256xf32>
    %19 = arith.select %16, %17, %18 : vector<2x16x256xi1>, vector<2x16x256xf32>
    %c16_i32 = arith.constant 16 : i32
    %20 = tpu.dynamic_rotate %19 by %c16_i32 dim 2 : vector<2x16x256xf32>, i32 -> vector<2x16x256xf32>
    %21 = vector.extract_strided_slice %13 {offsets = [0, 0, 0], sizes = [1, 1, 256], strides = [1, 1, 1]} : vector<3x3x256xf32> to vector<1x1x256xf32>
    %22 = vector.shape_cast %21 : vector<1x1x256xf32> to vector<256xf32>
    %23 = vector.shape_cast %22 : vector<256xf32> to vector<1x1x256xf32>
    %24 = vector.broadcast %23 : vector<1x1x256xf32> to vector<2x16x256xf32>
    %25 = arith.mulf %20, %24 : vector<2x16x256xf32>
    %26 = arith.addf %14, %25 : vector<2x16x256xf32>
    %27 = vector.extract_strided_slice %13 {offsets = [0, 1, 0], sizes = [1, 1, 256], strides = [1, 1, 1]} : vector<3x3x256xf32> to vector<1x1x256xf32>
    %28 = vector.shape_cast %27 : vector<1x1x256xf32> to vector<256xf32>
    %29 = vector.shape_cast %28 : vector<256xf32> to vector<1x1x256xf32>
    %30 = vector.broadcast %29 : vector<1x1x256xf32> to vector<2x16x256xf32>
    %31 = arith.mulf %19, %30 : vector<2x16x256xf32>
    %32 = arith.addf %26, %31 : vector<2x16x256xf32>
    %c240_i32 = arith.constant 240 : i32
    %33 = tpu.dynamic_rotate %19 by %c240_i32 dim 2 : vector<2x16x256xf32>, i32 -> vector<2x16x256xf32>
    %34 = vector.extract_strided_slice %13 {offsets = [0, 2, 0], sizes = [1, 1, 256], strides = [1, 1, 1]} : vector<3x3x256xf32> to vector<1x1x256xf32>
    %35 = vector.shape_cast %34 : vector<1x1x256xf32> to vector<256xf32>
    %36 = vector.shape_cast %35 : vector<256xf32> to vector<1x1x256xf32>
    %37 = vector.broadcast %36 : vector<1x1x256xf32> to vector<2x16x256xf32>
    %38 = arith.mulf %33, %37 : vector<2x16x256xf32>
    %39 = arith.addf %32, %38 : vector<2x16x256xf32>
    %c16_i32_14 = arith.constant 16 : i32
    %40 = tpu.dynamic_rotate %11 by %c16_i32_14 dim 2 : vector<2x16x256xf32>, i32 -> vector<2x16x256xf32>
    %41 = vector.extract_strided_slice %13 {offsets = [1, 0, 0], sizes = [1, 1, 256], strides = [1, 1, 1]} : vector<3x3x256xf32> to vector<1x1x256xf32>
    %42 = vector.shape_cast %41 : vector<1x1x256xf32> to vector<256xf32>
    %43 = vector.shape_cast %42 : vector<256xf32> to vector<1x1x256xf32>
    %44 = vector.broadcast %43 : vector<1x1x256xf32> to vector<2x16x256xf32>
    %45 = arith.mulf %40, %44 : vector<2x16x256xf32>
    %46 = arith.addf %39, %45 : vector<2x16x256xf32>
    %47 = vector.extract_strided_slice %13 {offsets = [1, 1, 0], sizes = [1, 1, 256], strides = [1, 1, 1]} : vector<3x3x256xf32> to vector<1x1x256xf32>
    %48 = vector.shape_cast %47 : vector<1x1x256xf32> to vector<256xf32>
    %49 = vector.shape_cast %48 : vector<256xf32> to vector<1x1x256xf32>
    %50 = vector.broadcast %49 : vector<1x1x256xf32> to vector<2x16x256xf32>
    %51 = arith.mulf %11, %50 : vector<2x16x256xf32>
    %52 = arith.addf %46, %51 : vector<2x16x256xf32>
    %c240_i32_15 = arith.constant 240 : i32
    %53 = tpu.dynamic_rotate %11 by %c240_i32_15 dim 2 : vector<2x16x256xf32>, i32 -> vector<2x16x256xf32>
    %54 = vector.extract_strided_slice %13 {offsets = [1, 2, 0], sizes = [1, 1, 256], strides = [1, 1, 1]} : vector<3x3x256xf32> to vector<1x1x256xf32>
    %55 = vector.shape_cast %54 : vector<1x1x256xf32> to vector<256xf32>
    %56 = vector.shape_cast %55 : vector<256xf32> to vector<1x1x256xf32>
    %57 = vector.broadcast %56 : vector<1x1x256xf32> to vector<2x16x256xf32>
    %58 = arith.mulf %53, %57 : vector<2x16x256xf32>
    %59 = arith.addf %52, %58 : vector<2x16x256xf32>
    %c14_i32 = arith.constant 14 : i32
    %60 = vector.broadcast %c14_i32 : i32 to vector<2x16x256xi32>
    %61 = arith.cmpi sle, %12, %60 : vector<2x16x256xi32>
    %c15_i32 = arith.constant 15 : i32
    %62 = tpu.dynamic_rotate %11 by %c15_i32 dim 1 : vector<2x16x256xf32>, i32 -> vector<2x16x256xf32>
    %cst_16 = arith.constant 0.000000e+00 : f32
    %63 = vector.broadcast %cst_16 : f32 to vector<2x16x256xf32>
    %64 = arith.select %61, %62, %63 : vector<2x16x256xi1>, vector<2x16x256xf32>
    %c16_i32_17 = arith.constant 16 : i32
    %65 = tpu.dynamic_rotate %64 by %c16_i32_17 dim 2 : vector<2x16x256xf32>, i32 -> vector<2x16x256xf32>
    %66 = vector.extract_strided_slice %13 {offsets = [2, 0, 0], sizes = [1, 1, 256], strides = [1, 1, 1]} : vector<3x3x256xf32> to vector<1x1x256xf32>
    %67 = vector.shape_cast %66 : vector<1x1x256xf32> to vector<256xf32>
    %68 = vector.shape_cast %67 : vector<256xf32> to vector<1x1x256xf32>
    %69 = vector.broadcast %68 : vector<1x1x256xf32> to vector<2x16x256xf32>
    %70 = arith.mulf %65, %69 : vector<2x16x256xf32>
    %71 = arith.addf %59, %70 : vector<2x16x256xf32>
    %72 = vector.extract_strided_slice %13 {offsets = [2, 1, 0], sizes = [1, 1, 256], strides = [1, 1, 1]} : vector<3x3x256xf32> to vector<1x1x256xf32>
    %73 = vector.shape_cast %72 : vector<1x1x256xf32> to vector<256xf32>
    %74 = vector.shape_cast %73 : vector<256xf32> to vector<1x1x256xf32>
    %75 = vector.broadcast %74 : vector<1x1x256xf32> to vector<2x16x256xf32>
    %76 = arith.mulf %64, %75 : vector<2x16x256xf32>
    %77 = arith.addf %71, %76 : vector<2x16x256xf32>
    %c240_i32_18 = arith.constant 240 : i32
    %78 = tpu.dynamic_rotate %64 by %c240_i32_18 dim 2 : vector<2x16x256xf32>, i32 -> vector<2x16x256xf32>
    %79 = vector.extract_strided_slice %13 {offsets = [2, 2, 0], sizes = [1, 1, 256], strides = [1, 1, 1]} : vector<3x3x256xf32> to vector<1x1x256xf32>
    %80 = vector.shape_cast %79 : vector<1x1x256xf32> to vector<256xf32>
    %81 = vector.shape_cast %80 : vector<256xf32> to vector<1x1x256xf32>
    %82 = vector.broadcast %81 : vector<1x1x256xf32> to vector<2x16x256xf32>
    %83 = arith.mulf %78, %82 : vector<2x16x256xf32>
    %84 = arith.addf %77, %83 : vector<2x16x256xf32>
    %c0_19 = arith.constant 0 : index
    %c0_20 = arith.constant 0 : index
    %85 = vector.load %arg5[%c0_19, %c0_20] : memref<1x256xf32, #tpu.memory_space<vmem>>, vector<1x256xf32>
    %86 = vector.shape_cast %85 : vector<1x256xf32> to vector<1x1x256xf32>
    %87 = vector.broadcast %86 : vector<1x1x256xf32> to vector<2x16x256xf32>
    %88 = arith.addf %84, %87 : vector<2x16x256xf32>
    %cst_21 = arith.constant 0.000000e+00 : f32
    %cst_22 = arith.constant 6.000000e+00 : f32
    %89 = vector.broadcast %cst_21 : f32 to vector<2x16x256xf32>
    %90 = arith.maximumf %89, %88 : vector<2x16x256xf32>
    %91 = vector.broadcast %cst_22 : f32 to vector<2x16x256xf32>
    %92 = arith.minimumf %91, %90 : vector<2x16x256xf32>
    %93 = vector.shape_cast %92 : vector<2x16x256xf32> to vector<32x256xf32>
    %c0_23 = arith.constant 0 : index
    %c0_24 = arith.constant 0 : index
    %94 = vector.load %arg6[%c0_23, %c0_24] : memref<256x128xf32, #tpu.memory_space<vmem>>, vector<256x128xf32>
    %cst_25 = arith.constant dense<0.000000e+00> : vector<32x128xf32>
    %95 = tpu.matmul %93, %94, %cst_25 {dimension_numbers = #tpu.dot_dimension_numbers<[1], [0], [0], [1], [0, 0, 1, 1], [], []>} : vector<32x256xf32>, vector<256x128xf32>, vector<32x128xf32> -> vector<32x128xf32>
    %c0_26 = arith.constant 0 : index
    %c0_27 = arith.constant 0 : index
    %96 = vector.load %arg7[%c0_26, %c0_27] : memref<1x128xf32, #tpu.memory_space<vmem>>, vector<1x128xf32>
    %97 = vector.broadcast %96 : vector<1x128xf32> to vector<32x128xf32>
    %98 = arith.addf %95, %97 : vector<32x128xf32>
    %99 = vector.shape_cast %98 : vector<32x128xf32> to vector<2x16x128xf32>
    %100 = arith.addf %99, %0 : vector<2x16x128xf32>
    %c0_28 = arith.constant 0 : index
    %c0_29 = arith.constant 0 : index
    %c0_30 = arith.constant 0 : index
    %101 = vector.load %arg8[%c0_28, %c0_29, %c0_30] : memref<2x16x128xf32, #tpu.memory_space<vmem>>, vector<2x16x128xf32>
    tpu.vector_store %arg8[%c0_28, %c0_29, %c0_30], %100 {strides = array<i32>} : memref<2x16x128xf32, #tpu.memory_space<vmem>>, vector<2x16x128xf32>,
    return
  }
  func.func @transform_0(%arg0: i32) -> (i32, i32, i32) {
    %c0_i32 = arith.constant 0 : i32
    %c0_i32_0 = arith.constant 0 : i32
    %c0_i32_1 = arith.constant 0 : i32
    return %arg0, %c0_i32, %c0_i32_0 : i32, i32, i32
  }
  func.func @transform_1(%arg0: i32) -> (i32, i32) {
    %c0_i32 = arith.constant 0 : i32
    %c0_i32_0 = arith.constant 0 : i32
    %c0_i32_1 = arith.constant 0 : i32
    return %c0_i32, %c0_i32_0 : i32, i32
  }
  func.func @transform_2(%arg0: i32) -> (i32, i32) {
    %c0_i32 = arith.constant 0 : i32
    %c0_i32_0 = arith.constant 0 : i32
    %c0_i32_1 = arith.constant 0 : i32
    return %c0_i32, %c0_i32_0 : i32, i32
  }
  func.func @transform_3(%arg0: i32) -> (i32, i32, i32) {
    %c0_i32 = arith.constant 0 : i32
    %c0_i32_0 = arith.constant 0 : i32
    %c0_i32_1 = arith.constant 0 : i32
    %c0_i32_2 = arith.constant 0 : i32
    return %c0_i32, %c0_i32_0, %c0_i32_1 : i32, i32, i32
  }
  func.func @transform_4(%arg0: i32) -> (i32, i32) {
    %c0_i32 = arith.constant 0 : i32
    %c0_i32_0 = arith.constant 0 : i32
    %c0_i32_1 = arith.constant 0 : i32
    return %c0_i32, %c0_i32_0 : i32, i32
  }
  func.func @transform_5(%arg0: i32) -> (i32, i32) {
    %c0_i32 = arith.constant 0 : i32
    %c0_i32_0 = arith.constant 0 : i32
    %c0_i32_1 = arith.constant 0 : i32
    return %c0_i32, %c0_i32_0 : i32, i32
  }
  func.func @transform_6(%arg0: i32) -> (i32, i32) {
    %c0_i32 = arith.constant 0 : i32
    %c0_i32_0 = arith.constant 0 : i32
    %c0_i32_1 = arith.constant 0 : i32
    return %c0_i32, %c0_i32_0 : i32, i32
  }
  func.func @transform_7(%arg0: i32) -> (i32, i32, i32) {
    %c0_i32 = arith.constant 0 : i32
    %c0_i32_0 = arith.constant 0 : i32
    %c0_i32_1 = arith.constant 0 : i32
    return %arg0, %c0_i32, %c0_i32_0 : i32, i32, i32
  }
}

</mosaic_0001>

<bundles_post_ra>
// kernel: tpu_custom_call.1
= control target key start
LH: loop header
LB: loop body
LE: loop exit
PB: predicated region body
PF: predicated region fallthrough
CT: control target
= control target key end

     0   :  { %s2685_s0 = inlined_call_operand.hbm [shape: f32[8,16,128], index: 0, kind: input, shape index: {}]   ;;  %s2686_s1 = inlined_call_operand.hbm [shape: f32[128,256], index: 1, kind: input, shape index: {}]   ;;  %s2687_s2 = inlined_call_operand.vmem [shape: f32[1,256], index: 2, kind: input, shape index: {}]   ;;  %s2688_s3 = inlined_call_operand.hbm [shape: f32[3,3,256], index: 3, kind: input, shape index: {}]   ;;  %s2689_s4 = inlined_call_operand.vmem [shape: f32[1,256], index: 4, kind: input, shape index: {}]   ;;  %s2690_s5 = inlined_call_operand.hbm [shape: f32[256,128], index: 5, kind: input, shape index: {}]   ;;  %s2691_s6 = inlined_call_operand.vmem [shape: f32[1,128], index: 6, kind: input, shape index: {}]   ;;  %s2692_s7 = inlined_call_operand.hbm [shape: f32[8,16,128], index: 7, kind: output, shape index: {}]  }
   0x1   :  { %2708 = sst [smem:[#allocation27_spill]] %s2686_s1 }
   0x2   :  { %12 = vsyncpa [#allocation3], 0 }
   0x3   :  { %14 = vsyncpa [#allocation3 + $0x1], 0 }
   0x4   :  { %15 = vsyncpa [#allocation6], 0 }
   0x5   :  { %16 = vsyncpa [#allocation9], 0 }
   0x6   :  { %17 = vsyncpa [#allocation4], 0 }
   0x7   :  { %19 = vsyncpa [#allocation4 + $0x1], 0  ;;  %s1768_s24 = smov 0   ;;  %s1770_s25 = smov 0  }
   0x8   :  { %s1772_s26 = smov 0   ;;  %s1774_s27 = smov 0  }
   0x9 LB: > { %s1789_s28 = sadd.s32 4294967295, %s1712_s27   ;;  %s1299_s29 = sadd.s32 4294967294, %s1712_s27   ;;  %s1712_s27 = sphi %s1774_s27, %s2752_s27   ;;  %s1708_s26 = sphi %s1772_s26, %s2751_s26   ;;  %s1704_s25 = sphi %s1770_s25, %s2750_s25   ;;  %s1700_s24 = sphi %s1768_s24, %s2749_s24  }
   0xa   : > { %p45_p0 = scmp.ne.s32.totalorder %s1704_s25, %s1700_s24  ;;  %p2693_p1 = scmp.eq.s32.totalorder %s1789_s28, 0 }
   0xb   : > { %p201_p3 = scmp.eq.s32.totalorder %s1299_s29, 3  ;;  %p1300_p5 = scmp.ge.s32.totalorder %s1712_s27, 1 }
   0xc   : > { %p1798_p4 = por %p2693_p1, %p45_p0  ;;  %p208_p7 = scmp.lt.s32.totalorder %s1712_s27, 5 }
   0xd   : > { %p1803_p6 = por %p201_p3, %p45_p0  ;;  %s1714_s10 = smov [#allocation5]  }
   0xe   : > { %s2709_s30 = scalar_select %p1798_p4, 1, 0 }
   0xf   : > { %s2710_s8 = scalar_select %p1803_p6, 1, 0 }
  0x10   : > { %p1808_p8 = pnand %p1300_p5, %p208_p7  ;;  %s220_s11 = sshll.u32 %s1714_s10, 4  ;;  %s221_s11 = int_to_ptr.vmem [resolvable:$true] %s220_s11 }
  0x11   : > { %2711 = sst [smem:[#allocation15_spill]] %s2710_s8  ;;  %s1715_s13 = smov [#allocation7]  }
  0x12   : > { %s2712_s9 = scalar_select %p1808_p8, 1, 0 }
  0x13   : > { %p1450_p9 = pneg %p1808_p8  ;;  %s236_s14 = sshll.u32 %s1715_s13, 4  ;;  %s1820_s14 = int_to_ptr.vmem [resolvable:$true] %s236_s14 }
  0x14   : > { %s2714_s1 = sld [smem:[#allocation27_spill]] }
  0x15   : > { %p1816_p10 = pnand %p1450_p9, %p2693_p1 }
  0x17   : > { %p1830_p12 = pneg %p1816_p10 }
  0x1a   : > { %s1524_s17 = scalar_lea.hbm %s2714_s1, 4096 }
  0x1b   : > { %p1525_p11 = scmp.ne.s32.totalorder %s2714_s1, %s1524_s17  ;;  %p1531_p3 = scmp.lt.u32.totalorder %s1524_s17, %s2714_s1 }
  0x1d   : > { %p1527_p13 = pnand %p1830_p12, %p1525_p11 }
  0x1f   : > { %p1528_p0 = pneg %p1527_p13 }
  0x21   : > { %p1533_p5 = pnand %p1531_p3, %p1528_p0 }
  0x23   : > { %1536 = shalt.err (!%p1533_p5)
}
  0x24   : > { %s1537_s23 = scalar_lea.vmem %s221_s11, 4096  ;;  %p1545_p2 = scmp.lt.s32.totalorder %s221_s11, %s221_s11 }
  0x25   : > { %p1538_p7 = scmp.ne.s32.totalorder %s221_s11, %s1537_s23  ;;  %p1546_p6 = scmp.lt.s32.totalorder %s1537_s23, %s1537_s23 }
  0x27   : > { %p1540_p9 = pnand %p1538_p7, %p1830_p12  ;;  %p1547_p4 = por %p1546_p6, %p1545_p2 }
  0x29   : > { %p1541_p1 = pneg %p1540_p9 }
  0x2b   : > { %p1548_p8 = pnand %p1547_p4, %p1541_p1 }
  0x2d   : > { %1551 = shalt.err (!%p1548_p8)
}
  0x2e   : > { %s1716_s29 = smov 256   ;;  %s1717_s10 = smov 16  }
  0x2f   : > { %1453 = dma.hbm_to_vmem [thread:$0]  (!%p1816_p10), %s2714_s1, 4096, %s221_s11, [#allocation6], %s1716_s29, %s1716_s29, %s1717_s10  }
  0x30   : > { %s1552_s18 = scalar_lea.hbm %s2688_s3, 384 }
  0x31   : > { %p1553_p11 = scmp.ne.s32.totalorder %s2688_s3, %s1552_s18  ;;  %p1559_p4 = scmp.lt.u32.totalorder %s1552_s18, %s2688_s3 }
  0x33   : > { %p1555_p1 = pnand %p1553_p11, %p1830_p12 }
  0x35   : > { %p1556_p2 = pneg %p1555_p1 }
  0x37   : > { %p1561_p6 = pnand %p1559_p4, %p1556_p2 }
  0x39   : > { %1564 = shalt.err (!%p1561_p6)
}
  0x3a   : > { %s1565_s11 = scalar_lea.vmem %s1820_s14, 384  ;;  %p1573_p3 = scmp.lt.s32.totalorder %s1820_s14, %s1820_s14 }
  0x3b   : > { %p1566_p8 = scmp.ne.s32.totalorder %s1820_s14, %s1565_s11  ;;  %p1574_p5 = scmp.lt.s32.totalorder %s1565_s11, %s1565_s11 }
  0x3d   : > { %p1568_p13 = pnand %p1566_p8, %p1830_p12  ;;  %p1575_p7 = por %p1574_p5, %p1573_p3 }
  0x3f   : > { %p1569_p0 = pneg %p1568_p13 }
  0x41   : > { %p1576_p9 = pnand %p1575_p7, %p1569_p0 }
  0x43   : > { %1579 = shalt.err (!%p1576_p9)
}
  0x44   : > { %s1718_s29 = smov 128   ;;  %s1719_s10 = smov 8  }
  0x45   : > { %1456 = dma.hbm_to_vmem [thread:$0]  (!%p1816_p10), %s2688_s3, 384, %s1820_s14, [#allocation6], %s1718_s29, %s1718_s29, %s1719_s10  }
  0x46   : > { %s1720_s16 = smov [#allocation8]   ;;  %s1873_s18 = sadd.s32 1, %s1712_s27  }
  0x47   : > { %s252_s17 = sshll.u32 %s1720_s16, 4  ;;  %s1580_s22 = scalar_lea.hbm %s2690_s5, 4096  ;;  %s253_s17 = int_to_ptr.vmem [resolvable:$true] %s252_s17 }
  0x48   : > { %p1581_p11 = scmp.ne.s32.totalorder %s2690_s5, %s1580_s22  ;;  %p1587_p4 = scmp.lt.u32.totalorder %s1580_s22, %s2690_s5 }
  0x4a   : > { %p1583_p1 = pnand %p1581_p11, %p1830_p12 }
  0x4c   : > { %p1584_p2 = pneg %p1583_p1 }
  0x4e   : > { %p1589_p6 = pnand %p1587_p4, %p1584_p2 }
  0x50   : > { %1592 = shalt.err (!%p1589_p6)
}
  0x51   : > { %s1593_s14 = scalar_lea.vmem %s253_s17, 4096  ;;  %p1601_p3 = scmp.lt.s32.totalorder %s253_s17, %s253_s17 }
  0x52   : > { %p1594_p8 = scmp.ne.s32.totalorder %s253_s17, %s1593_s14  ;;  %p1602_p5 = scmp.lt.s32.totalorder %s1593_s14, %s1593_s14 }
  0x54   : > { %p1596_p13 = pnand %p1594_p8, %p1830_p12  ;;  %p1603_p7 = por %p1602_p5, %p1601_p3 }
  0x56   : > { %p1597_p0 = pneg %p1596_p13 }
  0x58   : > { %p1604_p9 = pnand %p1603_p7, %p1597_p0 }
  0x5a   : > { %1607 = shalt.err (!%p1604_p9)
}
  0x5b   : > { %1459 = dma.hbm_to_vmem [thread:$0]  (!%p1816_p10), %s2690_s5, 4096, %s253_s17, [#allocation9], %s1718_s29, %s1718_s29, %s1719_s10  }
  0x5c   : > { %s29_s20 = ssub.s32 %s1712_s27, %s1873_s18  ;;  %s32_s12 = sadd.s32 1, %s1708_s26 }
  0x5d   : > { %p30_p12 = scmp.eq.s32.totalorder %s29_s20, 0  ;;  %p39_p11 = scmp.ne.s32.totalorder %s1708_s26, %s1704_s25 }
  0x5e   : > { %p40_p1 = scmp.eq.s32.totalorder %s1712_s27, 0  ;;  %p1471_p2 = scmp.lt.s32.totalorder %s1712_s27, 4 }
  0x5f   : > { %s1904_s13 = scalar_select %p30_p12, %s1708_s26, %s32_s12  }
  0x60   : > { %p41_p4 = por %p40_p1, %p39_p11  ;;  %p2716_p6 = scmp.eq.s32.totalorder %s1789_s28, 3 }
  0x61   : > { %s269_s16 = sand.u32 1, %s1708_s26   ;;  %s1323_s19 = sshll.u32 %s1712_s27, 9 }
  0x62   : > { %p1908_p8 = por %p2716_p6, %p39_p11  ;;  %s1305_s21 = sshll.u32 %s269_s16, 5 }
  0x63   : > { %s1917_s17 = scalar_lea.hbm %s2685_s0, %s1323_s19  ;;  %s273_s11 = scalar_lea.vmem [#allocation2], %s1305_s21 }
  0x64   : > { %s281_s14 = sshll.u32 %s273_s11, 4  ;;  %p1919_p10 = pnand %p1471_p2, %p41_p4  ;;  %s1923_s14 = int_to_ptr.vmem [resolvable:$true] %s281_s14 }
  0x65   : > { %s1925_s8 = scalar_lea.sflag [#allocation3], %s269_s16  ;;  %s1608_s20 = scalar_lea.hbm %s1917_s17, 512 }
  0x66   : > { %p1609_p13 = scmp.ne.s32.totalorder %s1917_s17, %s1608_s20  ;;  %p1610_p0 = pneg %p1919_p10 }
  0x67   : > { %s1613_s21 = scalar_lea.hbm %s2685_s0, 2048  ;;  %p1614_p7 = scmp.lt.u32.totalorder %s1917_s17, %s2685_s0 }
  0x68   : > { %p1611_p3 = pnand %p1610_p0, %p1609_p13  ;;  %p1615_p9 = scmp.lt.u32.totalorder %s1613_s21, %s1608_s20 }
  0x69   : > { %p1617_p11 = scmp.lt.u32.totalorder %s1608_s20, %s1917_s17 }
  0x6a   : > { %p1612_p5 = pneg %p1611_p3  ;;  %p1616_p12 = por %p1615_p9, %p1614_p7 }
  0x6c   : > { %p1618_p1 = por %p1617_p11, %p1616_p12 }
  0x6e   : > { %p1619_p2 = pnand %p1618_p1, %p1612_p5 }
  0x70   : > { %1622 = shalt.err (!%p1619_p2)
}
  0x71   : > { %s1623_s16 = scalar_lea.vmem %s1923_s14, 512  ;;  %s1721_s11 = smov [#allocation2]  }
  0x72   : > { %p1624_p4 = scmp.ne.s32.totalorder %s1923_s14, %s1623_s16  ;;  %s1628_s12 = sshll.u32 %s1721_s11, 4  ;;  %s1629_s12 = int_to_ptr.vmem [resolvable:$false] %s1628_s12 }
  0x73   : > { %s1630_s19 = scalar_lea.vmem %s1629_s12, 1024  ;;  %p1631_p3 = scmp.lt.s32.totalorder %s1923_s14, %s1629_s12 }
  0x74   : > { %p1626_p6 = pnand %p1624_p4, %p1610_p0  ;;  %p1632_p7 = scmp.lt.s32.totalorder %s1630_s19, %s1623_s16 }
  0x76   : > { %p1627_p13 = pneg %p1626_p6  ;;  %p1633_p9 = por %p1632_p7, %p1631_p3 }
  0x78   : > { %p1634_p12 = pnand %p1633_p9, %p1627_p13 }
  0x7a   : > { %1637 = shalt.err (!%p1634_p12)
}
  0x7b   : > { %1463 = dma.hbm_to_vmem [thread:$0]  (!%p1919_p10), %s1917_s17, 512, %s1923_s14, %s1925_s8, %s1718_s29, %s1718_s29, %s1719_s10  }
  0x7c   : > { %p2719_p0 = scmp.ne.s32.totalorder %s2712_s9, 0 }
  0x7e   : > { %293 = sbr.rel (%p2719_p0) target bundleno = 851 (0x353), region = 48 }
  0x85   : > { %s1959_s20 = sand.u32 1, %s1704_s25   ;;  %p2720_p5 = scmp.ne.s32.totalorder %s2709_s30, 0 }
  0x86   : > { %s1310_s21 = sshll.u32 %s1959_s20, 5  ;;  %s296_s22 = scalar_lea.sflag [#allocation3], %s1959_s20 }
  0x87   : > { %s1965_s1 = scalar_lea.vmem [#allocation2], %s1310_s21 }
  0x88   : > { %1683 = dma.done.wait (%p2720_p5), %s296_s22, 512  }
  0x89   : > { %1685 = vsyncadd (%p2720_p5), %s296_s22, 4294966784  ;;  %p2721_p10 = scmp.eq.s32.totalorder %s1789_s28, 0 }
  0x8b   : > { %1687 = dma.done.wait (%p2721_p10), [#allocation6], 4480   ;;  %p2722_p11 = pmov %p2721_p10 }
  0x8c   : > { %p2723_p1 = pmov %p2721_p10 }
  0x8d   : > { %1689 = vsyncadd (%p2722_p11), [#allocation6], 4294962816 }
  0x8e   : > { %1691 = dma.done.wait (%p2723_p1), [#allocation9], 4096   ;;  %p2724_p2 = pmov %p2723_p1 }
  0x8f   : > { %v1722_v0 = vmov 0.0   ;;  %v349_v1 = vld [vmem:[#allocation5 + $0x8] sm:$0xff]  ;;  %v351_v2 = vld [vmem:[#allocation5 + $0x18] sm:$0xff]  ;;  %v348_v3 = vld [vmem:[#allocation5] sm:$0xff]  ;;  %v382_v53 = vlaneseq  ;;  %s1723_s29 = smov 16   ;;  %s1724_s10 = smov 112  }
  0x90   : > { %1693 = vsyncadd (%p2724_p2), [#allocation9], 4294963200  ;;  %456 = vmatprep.mubr.f32.mxu0 %v1722_v0  ;;  %v1370_v4 = vpack.c.bf16 %v351_v2, %v349_v1  ;;  %v350_v5 = vld [vmem:[#allocation5 + $0x10] sm:$0xff]  ;;  %v353_v6 = vld [vmem:[#allocation5 + $0x28] sm:$0xff]  ;;  %s341_s16 = scalar_lea.vmem [#allocation10], %s1310_s21  ;;  %s1325_s12 = sshll.u32 %s1789_s28, 9 }
  0x91   : > { %v355_v7 = vld [vmem:[#allocation5 + $0x38] sm:$0xff]  ;;  %v1372_v8 = vpack.c.bf16 %v350_v5, %v348_v3  ;;  %v352_v10 = vld [vmem:[#allocation5 + $0x20] sm:$0xff]  ;;  %v354_v11 = vld [vmem:[#allocation5 + $0x30] sm:$0xff]  ;;  %v1988_v54 = vshrl.u32 %v382_v53, 7  ;;  %s1197_s11 = sshll.u32 %s341_s16, 4  ;;  %s2641_s22 = scalar_lea.hbm %s2692_s7, %s1325_s12  ;;  %s2636_s11 = int_to_ptr.vmem [resolvable:$true] %s1197_s11 }
  0x92   : > { %v1374_v9 = vpack.c.bf16 %v355_v7, %v353_v6  ;;  %v357_v12 = vld [vmem:[#allocation5 + $0x48] sm:$0xff]  ;;  %1371 = vmatprep.subr.bf16.mxu0 %v1370_v4  ;;  %v359_v13 = vld [vmem:[#allocation5 + $0x58] sm:$0xff]  ;;  %v1376_v14 = vpack.c.bf16 %v354_v11, %v352_v10  ;;  %v356_v16 = vld [vmem:[#allocation5 + $0x40] sm:$0xff]  ;;  %s1183_s30 = scalar_lea.sflag [#allocation4], %s1959_s20  ;;  %s1638_s9 = scalar_lea.vmem %s2636_s11, 512 }
  0x93   : > { %1373 = vmatpush1.bf16.msra.mxu0 %v1372_v8  ;;  %v1378_v15 = vpack.c.bf16 %v359_v13, %v357_v12  ;;  %v358_v17 = vld [vmem:[#allocation5 + $0x50] sm:$0xff]  ;;  %v361_v18 = vld [vmem:[#allocation5 + $0x68] sm:$0xff]  ;;  %v363_v19 = vld [vmem:[#allocation5 + $0x78] sm:$0xff]  ;;  %v1991_v55 = vsub.s32 0, %v1988_v54  ;;  %v1997_v57 = vsub.s32 1, %v1988_v54  ;;  %vm513_vm0 = vcmp.lt.s32.totalorder %v1988_v54, 1  ;;  %p1639_p4 = scmp.ne.s32.totalorder %s2636_s11, %s1638_s9 }
  0x94   : > { %1375 = vmatprep.subr.bf16.mxu0 %v1374_v9  ;;  %v1380_v20 = vpack.c.bf16 %v358_v17, %v356_v16  ;;  %v1382_v21 = vpack.c.bf16 %v363_v19, %v361_v18  ;;  %v360_v22 = vld [vmem:[#allocation5 + $0x60] sm:$0xff]  ;;  %v362_v23 = vld [vmem:[#allocation5 + $0x70] sm:$0xff]  ;;  %v365_v24 = vld [vmem:[#allocation5 + $0x88] sm:$0xff]  ;;  %vm846_vm1 = vcmp.lt.s32.totalorder %v1988_v54, 7  ;;  %vm503_vm2 = vcmp.ge.s32.totalorder %v1988_v54, 1  ;;  %s1725_s28 = smov [#allocation10]  }
  0x95   : > { %v367_v25 = vld [vmem:[#allocation5 + $0x98] sm:$0xff]  ;;  %v1384_v26 = vpack.c.bf16 %v362_v23, %v360_v22  ;;  %v364_v28 = vld [vmem:[#allocation5 + $0x80] sm:$0xff]  ;;  %v366_v29 = vld [vmem:[#allocation5 + $0x90] sm:$0xff]  ;;  %p1640_p6 = pnand %p1639_p4, %p1908_p8 }
  0x96   : > { %v1386_v27 = vpack.c.bf16 %v367_v25, %v365_v24  ;;  %v369_v30 = vld [vmem:[#allocation5 + $0xa8] sm:$0xff]  ;;  %v371_v31 = vld [vmem:[#allocation5 + $0xb8] sm:$0xff]  ;;  %v1388_v32 = vpack.c.bf16 %v366_v29, %v364_v28  ;;  %v368_v34 = vld [vmem:[#allocation5 + $0xa0] sm:$0xff] }
  0x97   : > { %1377 = vmatpush1.bf16.msra.mxu0 %v1376_v14  ;;  %v1390_v33 = vpack.c.bf16 %v371_v31, %v369_v30  ;;  %v370_v35 = vld [vmem:[#allocation5 + $0xb0] sm:$0xff]  ;;  %v373_v36 = vld [vmem:[#allocation5 + $0xc8] sm:$0xff]  ;;  %v375_v37 = vld [vmem:[#allocation5 + $0xd8] sm:$0xff]  ;;  %p1641_p13 = pneg %p1640_p6 }
  0x98   : > { %1379 = vmatprep.subr.bf16.mxu0 %v1378_v15  ;;  %v1392_v38 = vpack.c.bf16 %v370_v35, %v368_v34  ;;  %v1394_v39 = vpack.c.bf16 %v375_v37, %v373_v36  ;;  %v372_v40 = vld [vmem:[#allocation5 + $0xc0] sm:$0xff]  ;;  %v374_v41 = vld [vmem:[#allocation5 + $0xd0] sm:$0xff]  ;;  %v377_v42 = vld [vmem:[#allocation5 + $0xe8] sm:$0xff] }
  0x99   : > { %v379_v43 = vld [vmem:[#allocation5 + $0xf8] sm:$0xff]  ;;  %v1396_v44 = vpack.c.bf16 %v374_v41, %v372_v40  ;;  %v376_v46 = vld [vmem:[#allocation5 + $0xe0] sm:$0xff]  ;;  %v378_v47 = vld [vmem:[#allocation5 + $0xf0] sm:$0xff] }
  0x9a   : > { %v1398_v45 = vpack.c.bf16 %v379_v43, %v377_v42  ;;  %v1400_v48 = vpack.c.bf16 %v378_v47, %v376_v46  ;;  %v344_v49 = vld [vmem:[%s1965_s1] sm:$0xff]  ;;  %v345_v50 = vld [vmem:[%s1965_s1 + $0x8] sm:$0xff]  ;;  %v346_v51 = vld [vmem:[%s1965_s1 + $0x10] sm:$0xff] }
  0x9b   : > { %1381 = vmatpush1.bf16.msra.mxu0 %v1380_v20  ;;  %v347_v52 = vld [vmem:[%s1965_s1 + $0x18] sm:$0xff]  ;;  %v380_v56 = vld [vmem:[%s2687_s2] sm:$0x3] }
  0x9c   : > { %1383 = vmatprep.subr.bf16.mxu0 %v1382_v21  ;;  %v2000_v58 = vrot.slane %v380_v56, %v1991_v55  ;;  %v389_v59 = vrot.slane %v380_v56, %v1997_v57  ;;  %v1066_v46 = vld [vmem:[#allocation8 + $0x80] sm:$0xff]  ;;  %v1067_v47 = vld [vmem:[#allocation8 + $0x88] sm:$0xff]  ;;  %v1068_v56 = vld [vmem:[#allocation8 + $0x90] sm:$0xff] }
  0x9f   : > { %1385 = vmatpush1.bf16.msra.mxu0 %v1384_v26 }
  0xa0   : > { %1387 = vmatprep.subr.bf16.mxu0 %v1386_v27 }
  0xa3   : > { %1389 = vmatpush1.bf16.msra.mxu0 %v1388_v32 }
  0xa4   : > { %1391 = vmatprep.subr.bf16.mxu0 %v1390_v33 }
  0xa7   : > { %1393 = vmatpush1.bf16.msra.mxu0 %v1392_v38 }
  0xa8   : > { %1395 = vmatprep.subr.bf16.mxu0 %v1394_v39 }
  0xab   : > { %1397 = vmatpush1.bf16.msra.mxu0 %v1396_v44 }
  0xac   : > { %1399 = vmatprep.subr.bf16.mxu0 %v1398_v45  ;;  %v2106_v45 = vadd.s32 8, %v1988_v54 }
  0xae   : > { %vm837_vm3 = vcmp.le.s32.totalorder %v2106_v45, 14 }
  0xaf   : > { %1401 = vmatpush1.bf16.msra.mxu0 %v1400_v48  ;;  %v1402_v48 = vpack.c.bf16 %v1067_v47, %v1066_v46 }
  0xb1   : > { %1403 = vmatprep.subr.bf16.mxu1 %v1402_v48  ;;  %v1078_v48 = vld [vmem:[#allocation8 + $0xe0] sm:$0xff] }
  0xb2   : > { %457 = vmatmul.mubr.f32.vlgmr.msra.gmra.mrb[0].mxu0 %v344_v49  ;;  %v1050_v49 = vld [vmem:[#allocation8] sm:$0xff] }
  0xb3   : > { %462 = vmatprep.mubr.f32.mxu0 %v1722_v0 }
  0xb6   : > { %463 = vmatmul.mubr.f32.gmra.mrb[2].mxu0 %v345_v50  ;;  %v1051_v50 = vld [vmem:[#allocation8 + $0x8] sm:$0xff] }
  0xb7   : > { %468 = vmatprep.mubr.f32.mxu0 %v1722_v0 }
  0xba   : > { %469 = vmatmul.mubr.f32.gmra.mrb[4].mxu0 %v346_v51 }
  0xbb   : > { %474 = vmatprep.mubr.f32.mxu0 %v1722_v0 }
  0xbe   : > { %475 = vmatmul.mubr.f32.gmra.mrb[6].mxu0 %v347_v52  ;;  %v1404_v52 = vpack.c.bf16 %v1051_v50, %v1050_v49  ;;  %v1079_v49 = vld [vmem:[#allocation8 + $0xe8] sm:$0xff]  ;;  %v1062_v50 = vld [vmem:[#allocation8 + $0x60] sm:$0xff] }
  0xc0   : > { %1405 = vmatpush3.bf16.msra.mxu1 %v1404_v52  ;;  %v1426_v52 = vpack.c.bf16 %v1079_v49, %v1078_v48 }
 0x185   : > { %v458_v60 = vpop.f32.mrb[0].mxu0 }
 0x186   : > { %v459_v61 = vadd.f32 %v458_v60, %v2000_v58  ;;  %v460_v62 = vpop.f32.mrb[1].mxu0  ;;  %v1052_v60 = vld [vmem:[#allocation8 + $0x10] sm:$0xff] }
 0x187   : > { %v461_v63 = vadd.f32 %v460_v62, %v389_v59  ;;  %v1053_v62 = vld [vmem:[#allocation8 + $0x18] sm:$0xff] }
 0x188   : > { %v481_v0 = vmax.f32 %v459_v61, 0.0 }
 0x189   : > { %v482_v1 = vmax.f32 %v461_v63, 0.0  ;;  %v464_v2 = vpop.f32.mrb[2].mxu0 }
 0x18a   : > { %v2004_v3 = vmin.f32 %v481_v0, 6.0  ;;  %v465_v4 = vadd.f32 %v464_v2, %v2000_v58  ;;  %v466_v5 = vpop.f32.mrb[3].mxu0  ;;  %v1408_v0 = vpack.c.bf16 %v1053_v62, %v1052_v60  ;;  %v1071_v2 = vld [vmem:[#allocation8 + $0xa8] sm:$0xff]  ;;  %v1080_v62 = vld [vmem:[#allocation8 + $0xf0] sm:$0xff] }
 0x18b   : > { %v2007_v6 = vmin.f32 %v482_v1, 6.0  ;;  %v467_v7 = vadd.f32 %v466_v5, %v389_v59  ;;  %v1070_v1 = vld [vmem:[#allocation8 + $0xa0] sm:$0xff] }
 0x18c   : > { %v483_v8 = vmax.f32 %v465_v4, 0.0  ;;  %685 = vrot.lane.b32.xlu0 %v2004_v3, %s1723_s29  ;;  %v505_v15 = vrot.slane %v2004_v3, 7  ;;  %v838_v17 = vrot.slane %v2004_v3, 1  ;;  %v1410_v5 = vpack.c.bf16 %v1071_v2, %v1070_v1 }
 0x18d   : > { %v484_v9 = vmax.f32 %v467_v7, 0.0  ;;  %693 = vrot.lane.b32.xlu1 %v2007_v6, %s1723_s29  ;;  %v470_v10 = vpop.f32.mrb[4].mxu0  ;;  %v506_v19 = vrot.slane %v2007_v6, 7  ;;  %v839_v29 = vrot.slane %v2007_v6, 1  ;;  %v1054_v7 = vld [vmem:[#allocation8 + $0x20] sm:$0xff] }
 0x18e   : > { %v2013_v11 = vmin.f32 %v483_v8, 6.0  ;;  %v472_v12 = vpop.f32.mrb[5].mxu0  ;;  %v471_v42 = vadd.f32 %v470_v10, %v2000_v58  ;;  %v1055_v8 = vld [vmem:[#allocation8 + $0x28] sm:$0xff] }
 0x18f   : > { %v2015_v13 = vmin.f32 %v484_v9, 6.0  ;;  %v473_v14 = vadd.f32 %v472_v12, %v389_v59  ;;  %v1412_v10 = vpack.c.bf16 %v1055_v8, %v1054_v7  ;;  %v1072_v12 = vld [vmem:[#allocation8 + $0xb0] sm:$0xff]  ;;  %v1065_v7 = vld [vmem:[#allocation8 + $0x78] sm:$0xff] }
 0x190   : > { %778 = vrot.lane.b32.xlu0 %v2004_v3, %s1724_s10  ;;  %v509_v16 = vrot.slane %v2013_v11, 7  ;;  %v842_v18 = vrot.slane %v2013_v11, 1  ;;  %v485_v43 = vmax.f32 %v471_v42, 0.0  ;;  %v1061_v42 = vld [vmem:[#allocation8 + $0x58] sm:$0xff] }
 0x191   : > { %786 = vrot.lane.b32.xlu1 %v2007_v6, %s1724_s10  ;;  %v510_v20 = vrot.slane %v2015_v13, 7  ;;  %v2029_v21 = vpop.f32.mrb[6].mxu0  ;;  %v843_v22 = vrot.slane %v2015_v13, 1  ;;  %v486_v28 = vmax.f32 %v473_v14, 0.0  ;;  %v1073_v14 = vld [vmem:[#allocation8 + $0xb8] sm:$0xff] }
 0x192   : > { %v2034_v23 = vsel %vm513_vm0, %v505_v15, %v509_v16  ;;  %v518_v24 = vsel %vm513_vm0, %v509_v16, %v505_v15  ;;  %v2040_v25 = vsel %vm846_vm1, %v838_v17, %v842_v18  ;;  %v478_v26 = vpop.f32.mrb[7].mxu0  ;;  %v851_v33 = vsel %vm846_vm1, %v842_v18, %v838_v17  ;;  %v1056_v16 = vld [vmem:[#allocation8 + $0x30] sm:$0xff]  ;;  %v1057_v17 = vld [vmem:[#allocation8 + $0x38] sm:$0xff] }
 0x193   : > { %v2044_v27 = vsel %vm513_vm0, %v506_v19, %v510_v20  ;;  %v2053_v30 = vsel %vm846_vm1, %v839_v29, %v843_v22  ;;  %v479_v31 = vadd.f32 %v478_v26, %v389_v59  ;;  %v519_v32 = vsel %vm513_vm0, %v510_v20, %v506_v19  ;;  %v1069_v59 = vld [vmem:[#allocation8 + $0x98] sm:$0xff]  ;;  %v1074_v19 = vld [vmem:[#allocation8 + $0xc0] sm:$0xff]  ;;  %v1075_v20 = vld [vmem:[#allocation8 + $0xc8] sm:$0xff] }
 0x194   : > { %687 = vrot.lane.b32.xlu0 %v2013_v11, %s1723_s29  ;;  %v2059_v34 = vmin.f32 %v486_v28, 6.0  ;;  %v852_v36 = vsel %vm846_vm1, %v843_v22, %v839_v29  ;;  %v2076_v40 = vsel %vm503_vm2, %v518_v24, 0.0  ;;  %v2101_v44 = vmin.f32 %v485_v43, 6.0  ;;  %v1058_v24 = vld [vmem:[#allocation8 + $0x40] sm:$0xff]  ;;  %v1059_v26 = vld [vmem:[#allocation8 + $0x48] sm:$0xff]  ;;  %v1076_v29 = vld [vmem:[#allocation8 + $0xd0] sm:$0xff] }
 0x195   : > { %695 = vrot.lane.b32.xlu1 %v2015_v13, %s1723_s29  ;;  %v488_v35 = vmax.f32 %v479_v31, 0.0  ;;  %v2114_v51 = vsel %vm503_vm2, %v519_v32, 0.0  ;;  %v1406_v61 = vpack.c.bf16 %v1069_v59, %v1068_v56  ;;  %v2121_v63 = vsel %vm837_vm3, %v851_v33, 0.0  ;;  %v1077_v31 = vld [vmem:[#allocation8 + $0xd8] sm:$0xff]  ;;  %v1063_v56 = vld [vmem:[#allocation8 + $0x68] sm:$0xff] }
 0x196   : > { %2725 = vst [vmem:[#allocation16_spill] sm:$0xff] %v2059_v34  ;;  %v841_v38 = vrot.slane %v2059_v34, 1  ;;  %2727 = vst [vmem:[#allocation18_spill] sm:$0xff] %v2101_v44  ;;  %v477_v4 = vadd.f32 %v2029_v21, %v2000_v58  ;;  %v2133_v9 = vsel %vm837_vm3, %v852_v36, 0.0  ;;  %v1414_v58 = vpack.c.bf16 %v1073_v14, %v1072_v12  ;;  %v1060_v36 = vld [vmem:[#allocation8 + $0x50] sm:$0xff] }
 0x197   : > { %v2068_v37 = vmin.f32 %v488_v35, 6.0  ;;  %1407 = vmatprep.subr.bf16.mxu1 %v1406_v61  ;;  %v1416_v18 = vpack.c.bf16 %v1057_v17, %v1056_v16  ;;  %v1418_v22 = vpack.c.bf16 %v1075_v20, %v1074_v19  ;;  %v1420_v28 = vpack.c.bf16 %v1059_v26, %v1058_v24 }
 0x198   : > { %780 = vrot.lane.b32.xlu0 %v2013_v11, %s1724_s10  ;;  %1409 = vmatpush3.bf16.msra.mxu1 %v1408_v0  ;;  %v487_v15 = vmax.f32 %v477_v4, 0.0  ;;  %v507_v32 = vrot.slane %v2101_v44, 7  ;;  %v1422_v35 = vpack.c.bf16 %v1077_v31, %v1076_v29  ;;  %v508_v43 = vrot.slane %v2059_v34, 7  ;;  %v1081_v0 = vld [vmem:[#allocation8 + $0xf8] sm:$0xff]  ;;  %v500_v29 = vld [vmem:[#allocation7] sm:$0x77] }
 0x199   : > { %788 = vrot.lane.b32.xlu1 %v2015_v13, %s1724_s10  ;;  %2726 = vst [vmem:[#allocation17_spill] sm:$0xff] %v2068_v37  ;;  %v845_v39 = vrot.slane %v2068_v37, 1  ;;  %1411 = vmatprep.subr.bf16.mxu1 %v1410_v5  ;;  %v512_v46 = vrot.slane %v2068_v37, 7  ;;  %v1424_v47 = vpack.c.bf16 %v1061_v42, %v1060_v36  ;;  %v1428_v60 = vpack.c.bf16 %v1063_v56, %v1062_v50  ;;  %v1064_v5 = vld [vmem:[#allocation8 + $0x70] sm:$0xff] }
 0x19a   : > { %v2141_v21 = vmin.f32 %v487_v15, 6.0  ;;  %v840_v1 = vrot.slane %v2101_v44, 1  ;;  %v1430_v4 = vpack.c.bf16 %v1081_v0, %v1080_v62  ;;  %v1432_v8 = vpack.c.bf16 %v1065_v7, %v1064_v5  ;;  %v501_v56 = vld [vmem:[#allocation7 + $0x8] sm:$0x77] }
 0x19b   : > { %v2086_v41 = vsel %vm846_vm1, %v845_v39, %v841_v38  ;;  %v2163_v61 = vsel %vm513_vm0, %v508_v43, %v512_v46  ;;  %v2185_v12 = vsel %vm846_vm1, %v841_v38, %v845_v39  ;;  %v521_v15 = vsel %vm513_vm0, %v512_v46, %v508_v43 }
 0x19c   : > { %532 = vrot.lane.b32.xlu0 %v2034_v23, %s1723_s29  ;;  %1413 = vmatpush3.bf16.msra.mxu1 %v1412_v10  ;;  %2728 = vst [vmem:[#allocation19_spill] sm:$0xff] %v2141_v21  ;;  %v511_v33 = vrot.slane %v2141_v21, 7  ;;  %v844_v2 = vrot.slane %v2141_v21, 1  ;;  %2730 = vst [vmem:[#allocation21_spill] sm:$0xff] %v2185_v12  ;;  %v2201_v38 = vsel %vm503_vm2, %v521_v15, 0.0  ;;  %v2228_v17 = vsel %vm837_vm3, %v2086_v41, 0.0 }
 0x19d   : > { %626 = vrot.lane.b32.xlu1 %v2076_v40, %s1724_s10  ;;  %1415 = vmatprep.subr.bf16.mxu1 %v1414_v58  ;;  %2732 = vst [vmem:[#allocation23_spill] sm:$0xff] %v2228_v17  ;;  %v2247_v26 = vsub.s32 4, %v1988_v54  ;;  %v2252_v31 = vsub.s32 5, %v1988_v54  ;;  %v595_v42 = vrot.slane %v500_v29, %v1997_v57  ;;  %v2262_v46 = vsub.s32 2, %v1988_v54 }
 0x19e   : > { %v2157_v59 = vsel %vm513_vm0, %v507_v32, %v511_v33  ;;  %v2175_v10 = vsel %vm846_vm1, %v840_v1, %v844_v2  ;;  %v520_v14 = vsel %vm513_vm0, %v511_v33, %v507_v32  ;;  %v853_v39 = vsel %vm846_vm1, %v844_v2, %v840_v1 }
 0x19f   : > { %2729 = vst [vmem:[#allocation20_spill] sm:$0xff] %v2175_v10  ;;  %v2195_v58 = vsel %vm503_vm2, %v520_v14, 0.0  ;;  %v2217_v16 = vsel %vm837_vm3, %v853_v39, 0.0  ;;  %v561_v32 = vrot.slane %v500_v29, %v1991_v55  ;;  %v565_v33 = vrot.slane %v500_v29, %v2247_v26 }
 0x1a0   : > { %628 = vrot.lane.b32.xlu0 %v2034_v23, %s1724_s10  ;;  %1417 = vmatpush3.bf16.msra.mxu1 %v1416_v18  ;;  %2731 = vst [vmem:[#allocation22_spill] sm:$0xff] %v2217_v16  ;;  %v599_v43 = vrot.slane %v500_v29, %v2252_v31  ;;  %v2279_v62 = vrot.slane %v595_v42, %v1997_v57 }
 0x1a1   : > { %540 = vrot.lane.b32.xlu1 %v2044_v27, %s1723_s29  ;;  %1419 = vmatprep.subr.bf16.mxu1 %v1418_v22  ;;  %v2270_v49 = vrot.slane %v561_v32, %v1991_v55  ;;  %v2273_v50 = vrot.slane %v565_v33, %v1991_v55  ;;  %v713_v0 = vrot.slane %v501_v56, %v1991_v55 }
 0x1a2   : > { %v717_v1 = vrot.slane %v501_v56, %v2247_v26  ;;  %v751_v32 = vrot.slane %v501_v56, %v2252_v31  ;;  %v612_v33 = vmul.f32 %v2279_v62, %v2034_v23 }
 0x1a3   : > { %v2308_v42 = vrot.slane %v713_v0, %v1991_v55 }
 0x1a4   : > { %863 = vrot.lane.b32.xlu0 %v2040_v25, %s1723_s29  ;;  %1421 = vmatpush3.bf16.msra.mxu1 %v1420_v28 }
 0x1a5   : > { %636 = vrot.lane.b32.xlu1 %v2044_v27, %s1724_s10  ;;  %1423 = vmatprep.subr.bf16.mxu1 %v1422_v35  ;;  %v2257_v35 = vand.u32 127, %v382_v53  ;;  %v654_v53 = vrot.slane %v500_v29, %v2262_v46 }
 0x1a7   : > { %vm548_vm4 = vcmp.lt.s32.totalorder %v2257_v35, 16  ;;  %v2293_v14 = vrot.slane %v654_v53, %v2262_v46  ;;  %vm642_vm5 = vcmp.lt.s32.totalorder %v2257_v35, 112 }
 0x1a8   : > { %956 = vrot.lane.b32.xlu0 %v2040_v25, %s1724_s10  ;;  %1425 = vmatpush3.bf16.msra.mxu1 %v1424_v47  ;;  %v2265_v47 = vsub.s32 6, %v1988_v54  ;;  %v2282_v54 = vrot.slane %v599_v43, %v1997_v57  ;;  %v2311_v43 = vrot.slane %v717_v1, %v1991_v55 }
 0x1a9   : > { %871 = vrot.lane.b32.xlu1 %v2053_v30, %s1723_s29  ;;  %1427 = vmatprep.subr.bf16.mxu1 %v1426_v52 }
 0x1aa   : > { %v658_v52 = vrot.slane %v500_v29, %v2265_v47  ;;  %v747_v29 = vrot.slane %v501_v56, %v1997_v57 }
 0x1ac   : > { %530 = vrot.lane.b32.xlu0 %v2076_v40, %s1723_s29  ;;  %1429 = vmatpush3.bf16.msra.mxu1 %v1428_v60  ;;  %v2296_v15 = vrot.slane %v658_v52, %v2262_v46 }
 0x1ad   : > { %964 = vrot.lane.b32.xlu1 %v2053_v30, %s1724_s10  ;;  %1431 = vmatprep.subr.bf16.mxu1 %v1430_v4 }
 0x1b0   : > { %689 = vrot.lane.b32.xlu0 %v2101_v44, %s1723_s29  ;;  %1433 = vmatpush3.bf16.msra.mxu1 %v1432_v8 }
 0x1b1   : > { %634 = vrot.lane.b32.xlu1 %v2114_v51, %s1724_s10 }
 0x1b4   : > { %865 = vrot.lane.b32.xlu0 %v2121_v63, %s1723_s29 }
 0x1b5   : > { %697 = vrot.lane.b32.xlu1 %v2059_v34, %s1723_s29 }
 0x1b8   : > { %782 = vrot.lane.b32.xlu0 %v2101_v44, %s1724_s10 }
 0x1b9   : > { %873 = vrot.lane.b32.xlu1 %v2133_v9, %s1723_s29 }
 0x1bc   : > { %958 = vrot.lane.b32.xlu0 %v2121_v63, %s1724_s10 }
 0x1bd   : > { %790 = vrot.lane.b32.xlu1 %v2059_v34, %s1724_s10 }
 0x1c0   : > { %538 = vrot.lane.b32.xlu0 %v2114_v51, %s1723_s29 }
 0x1c1   : > { %966 = vrot.lane.b32.xlu1 %v2133_v9, %s1724_s10 }
 0x1c4   : > { %691 = vrot.lane.b32.xlu0 %v2141_v21, %s1723_s29 }
 0x1c5   : > { %699 = vrot.lane.b32.xlu1 %v2068_v37, %s1723_s29 }
 0x1c8   : > { %536 = vrot.lane.b32.xlu0 %v2157_v59, %s1723_s29 }
 0x1c9   : > { %544 = vrot.lane.b32.xlu1 %v2163_v61, %s1723_s29 }
 0x1cc   : > { %632 = vrot.lane.b32.xlu0 %v2157_v59, %s1724_s10 }
 0x1cd   : > { %640 = vrot.lane.b32.xlu1 %v2163_v61, %s1724_s10 }
 0x1d0   : > { %867 = vrot.lane.b32.xlu0 %v2175_v10, %s1723_s29 }
 0x1d1   : > { %875 = vrot.lane.b32.xlu1 %v2185_v12, %s1723_s29 }
 0x1d4   : > { %534 = vrot.lane.b32.xlu0 %v2195_v58, %s1723_s29 }
 0x1d5   : > { %542 = vrot.lane.b32.xlu1 %v2201_v38, %s1723_s29 }
 0x1d8   : > { %630 = vrot.lane.b32.xlu0 %v2195_v58, %s1724_s10 }
 0x1d9   : > { %638 = vrot.lane.b32.xlu1 %v2201_v38, %s1724_s10 }
 0x1dc   : > { %784 = vrot.lane.b32.xlu0 %v2141_v21, %s1724_s10 }
 0x1dd   : > { %792 = vrot.lane.b32.xlu1 %v2068_v37, %s1724_s10 }
 0x1e0   : > { %869 = vrot.lane.b32.xlu0 %v2217_v16, %s1723_s29 }
 0x1e1   : > { %968 = vrot.lane.b32.xlu1 %v2185_v12, %s1724_s10  ;;  %v2329_v12 = vrot.slane %v751_v32, %v1997_v57 }
 0x1e4   : > { %960 = vrot.lane.b32.xlu0 %v2175_v10, %s1724_s10 }
 0x1e5   : > { %877 = vrot.lane.b32.xlu1 %v2228_v17, %s1723_s29  ;;  %s1642_s29 = sshll.u32 %s1725_s28, 4  ;;  %s1643_s29 = int_to_ptr.vmem [resolvable:$false] %s1642_s29 }
 0x1e6   : > { %p1645_p3 = scmp.lt.s32.totalorder %s2636_s11, %s1643_s29 }
 0x1e8   : > { %962 = vrot.lane.b32.xlu0 %v2217_v16, %s1724_s10  ;;  %v2326_v16 = vrot.slane %v747_v29, %v1997_v57  ;;  %v765_v29 = vmul.f32 %v2329_v12, %v2015_v13 }
 0x1e9   : > { %970 = vrot.lane.b32.xlu1 %v2228_v17, %s1724_s10  ;;  %s1644_s10 = scalar_lea.vmem %s1643_s29, 1024 }
 0x1ea   : > { %p1646_p7 = scmp.lt.s32.totalorder %s1644_s10, %s1638_s9 }
 0x1ec   : > { %p1647_p9 = por %p1646_p7, %p1645_p3 }
 0x1ee   : > { %p1648_p12 = pnand %p1647_p9, %p1641_p13 }
 0x1fe   : > { %v2236_v18 = vpop.permute.xlu0 %685 }
 0x1ff   : > { %v2238_v19 = vpop.permute.xlu1 %693 }
 0x202   : > { %v2240_v20 = vpop.permute.xlu0 %778 }
 0x203   : > { %v2242_v22 = vpop.permute.xlu1 %786 }
 0x206   : > { %v688_v45 = vpop.permute.xlu0 %687 }
 0x207   : > { %v696_v41 = vpop.permute.xlu1 %695 }
 0x208   : > { %v702_v52 = vsel %vm548_vm4, %v688_v45, %v696_v41 }
 0x20a   : > { %v2244_v24 = vpop.permute.xlu0 %780 }
 0x20b   : > { %v2249_v28 = vpop.permute.xlu1 %788 }
 0x20e   : > { %v533_v36 = vpop.permute.xlu0 %532 }
 0x20f   : > { %v2267_v48 = vpop.permute.xlu1 %626 }
 0x212   : > { %v629_v60 = vpop.permute.xlu0 %628 }
 0x213   : > { %v541_v2 = vpop.permute.xlu1 %540 }
 0x214   : > { %v550_v4 = vsel %vm548_vm4, %v533_v36, %v541_v2  ;;  %v554_v5 = vsel %vm548_vm4, %v541_v2, %v533_v36  ;;  %v613_v36 = vmul.f32 %v2282_v54, %v2044_v27  ;;  %v706_v2 = vsel %vm548_vm4, %v696_v41, %v688_v45 }
 0x215   : > { %v578_v7 = vmul.f32 %v2270_v49, %v554_v5  ;;  %v579_v8 = vmul.f32 %v2273_v50, %v550_v4  ;;  %v730_v45 = vmul.f32 %v2308_v42, %v706_v2  ;;  %v731_v41 = vmul.f32 %v2311_v43, %v702_v52  ;;  %v2343_v52 = vld [vmem:[#allocation7 + $0x10] sm:$0x77] }
 0x216   : > { %v2299_v39 = vpop.permute.xlu0 %863  ;;  %v929_v13 = vrot.slane %v2343_v52, %v2252_v31 }
 0x217   : > { %v637_v53 = vpop.permute.xlu1 %636  ;;  %v620_v27 = vadd.f32 %v612_v33, %v578_v7  ;;  %v621_v5 = vadd.f32 %v613_v36, %v579_v8  ;;  %v764_v36 = vmul.f32 %v2326_v16, %v2013_v11  ;;  %v925_v11 = vrot.slane %v2343_v52, %v1997_v57 }
 0x218   : > { %v644_v4 = vsel %vm642_vm5, %v629_v60, %v637_v53  ;;  %v648_v23 = vsel %vm642_vm5, %v637_v53, %v629_v60 }
 0x219   : > { %v671_v0 = vmul.f32 %v2293_v14, %v644_v4  ;;  %v672_v1 = vmul.f32 %v2296_v15, %v648_v23 }
 0x21a   : > { %v2323_v17 = vpop.permute.xlu0 %956 }
 0x21b   : > { %v679_v10 = vadd.f32 %v671_v0, %v620_v27  ;;  %v680_v60 = vadd.f32 %v672_v1, %v621_v5  ;;  %v2333_v7 = vpop.permute.xlu1 %871  ;;  %v805_v5 = vrot.slane %v501_v56, %v2262_v46  ;;  %v891_v1 = vrot.slane %v2343_v52, %v1991_v55 }
 0x21d   : > { %v738_v8 = vadd.f32 %v730_v45, %v679_v10  ;;  %v739_v33 = vadd.f32 %v731_v41, %v680_v60  ;;  %v809_v10 = vrot.slane %v501_v56, %v2265_v47  ;;  %v895_v45 = vrot.slane %v2343_v52, %v2247_v26 }
 0x21e   : > { %v531_v53 = vpop.permute.xlu0 %530  ;;  %v795_v56 = vsel %vm642_vm5, %v2244_v24, %v2249_v28  ;;  %v799_v60 = vsel %vm642_vm5, %v2249_v28, %v2244_v24  ;;  %v2366_v31 = vrot.slane %v805_v5, %v2262_v46  ;;  %v2372_v26 = vrot.slane %v925_v11, %v1997_v57 }
 0x21f   : > { %v2339_v4 = vpop.permute.xlu1 %964  ;;  %v772_v32 = vadd.f32 %v764_v36, %v738_v8  ;;  %v773_v23 = vadd.f32 %v765_v29, %v739_v33  ;;  %v2369_v8 = vrot.slane %v809_v10, %v2262_v46  ;;  %v2375_v33 = vrot.slane %v929_v13, %v1997_v57 }
 0x220   : > { %v822_v29 = vmul.f32 %v2366_v31, %v795_v56  ;;  %v2382_v24 = vrot.slane %v891_v1, %v1991_v55  ;;  %v2385_v28 = vrot.slane %v895_v45, %v1991_v55  ;;  %v942_v1 = vmul.f32 %v2372_v26, %v2121_v63 }
 0x221   : > { %v823_v37 = vmul.f32 %v2369_v8, %v799_v60  ;;  %v943_v45 = vmul.f32 %v2375_v33, %v2133_v9 }
 0x222   : > { %v2341_v2 = vpop.permute.xlu0 %689  ;;  %v830_v13 = vadd.f32 %v822_v29, %v772_v32  ;;  %v611_v32 = vmul.f32 %v2282_v54, %v2114_v51  ;;  %v705_v51 = vsel %vm548_vm4, %v2238_v19, %v2236_v18 }
 0x223   : > { %2733 = vst [vmem:[#allocation24_spill] sm:$0xff] %v2341_v2  ;;  %v635_v27 = vpop.permute.xlu1 %634  ;;  %v831_v21 = vadd.f32 %v823_v37, %v773_v23  ;;  %v610_v37 = vmul.f32 %v2279_v62, %v2076_v40  ;;  %v701_v40 = vsel %vm548_vm4, %v2236_v18, %v2238_v19  ;;  %v794_v19 = vsel %vm642_vm5, %v2240_v20, %v2242_v22 }
 0x224   : > { %v643_v63 = vsel %vm642_vm5, %v2267_v48, %v635_v27  ;;  %v647_v9 = vsel %vm642_vm5, %v635_v27, %v2267_v48  ;;  %v987_v27 = vrot.slane %v2343_v52, %v2265_v47 }
 0x225   : > { %v670_v29 = vmul.f32 %v2296_v15, %v647_v9  ;;  %v763_v9 = vmul.f32 %v2329_v12, %v2007_v6 }
 0x226   : > { %v866_v0 = vpop.permute.xlu0 %865 }
 0x227   : > { %v2355_v41 = vpop.permute.xlu1 %697 }
 0x228   : > { %2734 = vst [vmem:[#allocation25_spill] sm:$0xff] %v2355_v41 }
 0x22a   : > { %v2377_v36 = vpop.permute.xlu0 %782 }
 0x22b   : > { %2735 = vst [vmem:[#allocation26_spill] sm:$0xff] %v2377_v36  ;;  %v874_v5 = vpop.permute.xlu1 %873 }
 0x22c   : > { %v880_v10 = vsel %vm548_vm4, %v866_v0, %v874_v5  ;;  %v884_v11 = vsel %vm548_vm4, %v874_v5, %v866_v0 }
 0x22d   : > { %v908_v36 = vmul.f32 %v2382_v24, %v884_v11  ;;  %v909_v56 = vmul.f32 %v2385_v28, %v880_v10 }
 0x22e   : > { %v959_v60 = vpop.permute.xlu0 %958 }
 0x22f   : > { %v916_v34 = vadd.f32 %v908_v36, %v830_v13  ;;  %v917_v44 = vadd.f32 %v909_v56, %v831_v21  ;;  %v2397_v41 = vpop.permute.xlu1 %790  ;;  %v728_v13 = vmul.f32 %v2308_v42, %v705_v51  ;;  %v729_v56 = vmul.f32 %v2311_v43, %v701_v40  ;;  %v1014_v51 = vld [vmem:[%s2689_s4] sm:$0x3] }
 0x231   : > { %v2399_v2 = vadd.f32 %v942_v1, %v916_v34  ;;  %v951_v0 = vadd.f32 %v943_v45, %v917_v44 }
 0x232   : > { %v539_v23 = vpop.permute.xlu0 %538 }
 0x233   : > { %v549_v34 = vsel %vm548_vm4, %v531_v53, %v539_v23  ;;  %v553_v44 = vsel %vm548_vm4, %v539_v23, %v531_v53  ;;  %v967_v21 = vpop.permute.xlu1 %966  ;;  %v669_v53 = vmul.f32 %v2293_v14, %v643_v63  ;;  %v2448_v23 = vrot.slane %v987_v27, %v2262_v46 }
 0x234   : > { %v576_v36 = vmul.f32 %v2270_v49, %v553_v44  ;;  %v577_v48 = vmul.f32 %v2273_v50, %v549_v34  ;;  %v977_v45 = vsel %vm642_vm5, %v967_v21, %v959_v60  ;;  %v762_v63 = vmul.f32 %v2326_v16, %v2004_v3 }
 0x235   : > { %v883_v3 = vsel %vm548_vm4, %v2333_v7, %v2299_v39  ;;  %v1001_v6 = vmul.f32 %v2448_v23, %v977_v45 }
 0x236   : > { %v618_v5 = vadd.f32 %v610_v37, %v576_v36  ;;  %v619_v10 = vadd.f32 %v611_v32, %v577_v48  ;;  %v2429_v11 = vpop.permute.xlu0 %691  ;;  %v798_v37 = vsel %vm642_vm5, %v2242_v22, %v2240_v20  ;;  %v983_v32 = vrot.slane %v2343_v52, %v2262_v46 }
 0x237   : > { %v2433_v18 = vpop.permute.xlu1 %699  ;;  %v820_v20 = vmul.f32 %v2366_v31, %v794_v19  ;;  %v879_v22 = vsel %vm548_vm4, %v2299_v39, %v2333_v7  ;;  %v821_v36 = vmul.f32 %v2369_v8, %v798_v37  ;;  %v972_v19 = vsel %vm642_vm5, %v2323_v17, %v2339_v4 }
 0x238   : > { %v677_v47 = vadd.f32 %v669_v53, %v618_v5  ;;  %v678_v1 = vadd.f32 %v670_v29, %v619_v10  ;;  %v973_v53 = vsel %vm642_vm5, %v959_v60, %v967_v21  ;;  %v2471_v29 = vrot.slane %v983_v32, %v2262_v46 }
 0x239   : > { %v2474_v5 = vrot.slane %v1014_v51, %v1997_v57  ;;  %v906_v10 = vmul.f32 %v2382_v24, %v883_v3  ;;  %v907_v39 = vmul.f32 %v2385_v28, %v879_v22  ;;  %v976_v46 = vsel %vm642_vm5, %v2339_v4, %v2323_v17  ;;  %v2736_v3 = vld [vmem:[#allocation24_spill] sm:$0xff] }
 0x23a   : > { %v736_v34 = vadd.f32 %v728_v13, %v677_v47  ;;  %v737_v44 = vadd.f32 %v729_v56, %v678_v1  ;;  %v537_v40 = vpop.permute.xlu0 %536  ;;  %v1000_v57 = vmul.f32 %v2471_v29, %v973_v53  ;;  %v1009_v60 = vadd.f32 %v1001_v6, %v951_v0  ;;  %v2737_v6 = vld [vmem:[#allocation25_spill] sm:$0xff] }
 0x23b   : > { %v545_v52 = vpop.permute.xlu1 %544  ;;  %v940_v47 = vmul.f32 %v2372_v26, %v2040_v25  ;;  %v941_v1 = vmul.f32 %v2375_v33, %v2053_v30  ;;  %v616_v32 = vmul.f32 %v2279_v62, %v2157_v59  ;;  %v614_v17 = vmul.f32 %v2279_v62, %v2195_v58 }
 0x23c   : > { %v770_v48 = vadd.f32 %v762_v63, %v736_v34  ;;  %v771_v27 = vadd.f32 %v763_v9, %v737_v44  ;;  %v617_v63 = vmul.f32 %v2282_v54, %v2163_v61  ;;  %v2498_v4 = vrot.slane %v1014_v51, %v1991_v55 }
 0x23d   : > { %v998_v0 = vmul.f32 %v2471_v29, %v972_v19  ;;  %v999_v25 = vmul.f32 %v2448_v23, %v976_v46  ;;  %v1008_v44 = vadd.f32 %v1000_v57, %v2399_v2  ;;  %v552_v59 = vsel %vm548_vm4, %v537_v40, %v545_v52 }
 0x23e   : > { %v828_v7 = vadd.f32 %v820_v20, %v770_v48  ;;  %v633_v13 = vpop.permute.xlu0 %632  ;;  %v829_v56 = vadd.f32 %v821_v36, %v771_v27  ;;  %v556_v61 = vsel %vm548_vm4, %v545_v52, %v537_v40  ;;  %v1029_v55 = vadd.f32 %v2474_v5, %v1009_v60  ;;  %v2738_v52 = vld [vmem:[#allocation18_spill] sm:$0xff]  ;;  %v2739_v48 = vld [vmem:[#allocation16_spill] sm:$0xff] }
 0x23f   : > { %v641_v21 = vpop.permute.xlu1 %640  ;;  %v615_v2 = vmul.f32 %v2282_v54, %v2201_v38  ;;  %v707_v40 = vsel %vm548_vm4, %v2737_v6, %v2736_v3  ;;  %v2524_v36 = vmul.f32 %v2326_v16, %v2738_v52  ;;  %v2528_v27 = vmul.f32 %v2329_v12, %v2739_v48 }
 0x240   : > { %v915_v45 = vadd.f32 %v907_v39, %v829_v56  ;;  %v914_v37 = vadd.f32 %v906_v10, %v828_v7  ;;  %v646_v62 = vsel %vm642_vm5, %v633_v13, %v641_v21  ;;  %v650_v51 = vsel %vm642_vm5, %v641_v21, %v633_v13 }
 0x241   : > { %v582_v53 = vmul.f32 %v2270_v49, %v556_v61  ;;  %v583_v10 = vmul.f32 %v2273_v50, %v552_v59  ;;  %v675_v7 = vmul.f32 %v2293_v14, %v646_v62  ;;  %v676_v13 = vmul.f32 %v2296_v15, %v650_v51 }
 0x242   : > { %v2502_v9 = vpop.permute.xlu0 %867  ;;  %v949_v30 = vadd.f32 %v941_v1, %v915_v45  ;;  %v948_v34 = vadd.f32 %v940_v47, %v914_v37  ;;  %v1037_v19 = vmax.f32 %v1029_v55, 0.0  ;;  %v1028_v46 = vadd.f32 %v2498_v4, %v1008_v44 }
 0x243   : > { %v2509_v58 = vpop.permute.xlu1 %875  ;;  %v703_v1 = vsel %vm548_vm4, %v2736_v3, %v2737_v6  ;;  %v732_v45 = vmul.f32 %v2308_v42, %v707_v40  ;;  %v704_v61 = vsel %vm548_vm4, %v2429_v11, %v2433_v18  ;;  %v708_v55 = vsel %vm548_vm4, %v2433_v18, %v2429_v11  ;;  %v2740_v18 = vld [vmem:[#allocation26_spill] sm:$0xff] }
 0x244   : > { %v1007_v20 = vadd.f32 %v999_v25, %v949_v30  ;;  %v1006_v22 = vadd.f32 %v998_v0, %v948_v34  ;;  %v624_v25 = vadd.f32 %v616_v32, %v582_v53  ;;  %v625_v30 = vadd.f32 %v617_v63, %v583_v10 }
 0x245   : > { %v1045_v51 = vmin.f32 %v1037_v19, 6.0  ;;  %v733_v11 = vmul.f32 %v2311_v43, %v703_v1  ;;  %v796_v52 = vsel %vm642_vm5, %v2740_v18, %v2397_v41  ;;  %v734_v48 = vmul.f32 %v2308_v42, %v708_v55  ;;  %v2744_v55 = vld [vmem:[#allocation21_spill] sm:$0xff] }
 0x246   : > { %v535_v39 = vpop.permute.xlu0 %534  ;;  %v1027_v38 = vadd.f32 %v2474_v5, %v1007_v20  ;;  %v1026_v54 = vadd.f32 %v2498_v4, %v1006_v22  ;;  %v683_v20 = vadd.f32 %v675_v7, %v624_v25  ;;  %v735_v53 = vmul.f32 %v2311_v43, %v704_v61 }
 0x247   : > { %v543_v56 = vpop.permute.xlu1 %542 }
 0x248   : > { %v551_v57 = vsel %vm548_vm4, %v535_v39, %v543_v56  ;;  %v555_v60 = vsel %vm548_vm4, %v543_v56, %v535_v39  ;;  %v1035_v21 = vmax.f32 %v1027_v38, 0.0  ;;  %v1034_v47 = vmax.f32 %v1026_v54, 0.0  ;;  %v2741_v56 = vld [vmem:[#allocation19_spill] sm:$0xff] }
 0x249   : > { %v580_v37 = vmul.f32 %v2270_v49, %v555_v60  ;;  %v581_v0 = vmul.f32 %v2273_v50, %v551_v57  ;;  %v1036_v49 = vmax.f32 %v1028_v46, 0.0  ;;  %v684_v50 = vadd.f32 %v676_v13, %v625_v30  ;;  %v2742_v46 = vld [vmem:[#allocation17_spill] sm:$0xff] }
 0x24a   : > { %v631_v34 = vpop.permute.xlu0 %630  ;;  %v1043_v44 = vmin.f32 %v1035_v21, 6.0  ;;  %v1042_v59 = vmin.f32 %v1034_v47, 6.0  ;;  %v742_v38 = vadd.f32 %v734_v48, %v683_v20  ;;  %v768_v19 = vmul.f32 %v2326_v16, %v2741_v56 }
 0x24b   : > { %v639_v62 = vpop.permute.xlu1 %638  ;;  %v622_v22 = vadd.f32 %v614_v17, %v580_v37  ;;  %v623_v3 = vadd.f32 %v615_v2, %v581_v0  ;;  %v1044_v39 = vmin.f32 %v1036_v49, 6.0  ;;  %v743_v54 = vadd.f32 %v735_v53, %v684_v50  ;;  %v2746_v53 = vld [vmem:[#allocation23_spill] sm:$0xff] }
 0x24c   : > { %v645_v32 = vsel %vm642_vm5, %v631_v34, %v639_v62  ;;  %v649_v63 = vsel %vm642_vm5, %v639_v62, %v631_v34  ;;  %1153 = vmatprep.mubr.f32.mxu1 %v1043_v44  ;;  %v881_v57 = vsel %vm548_vm4, %v2502_v9, %v2509_v58  ;;  %v885_v60 = vsel %vm548_vm4, %v2509_v58, %v2502_v9 }
 0x24d   : > { %v673_v6 = vmul.f32 %v2293_v14, %v645_v32  ;;  %v674_v40 = vmul.f32 %v2296_v15, %v649_v63  ;;  %1154 = vmatmul.mubr.f32.vlgmr.msra.gmra.mrb[0].mxu1 %v1042_v59  ;;  %v800_v14 = vsel %vm642_vm5, %v2397_v41, %v2740_v18  ;;  %v769_v41 = vmul.f32 %v2329_v12, %v2742_v46  ;;  %v2743_v59 = vld [vmem:[#allocation20_spill] sm:$0xff] }
 0x24e   : > { %1158 = vmatprep.mubr.f32.mxu1 %v1045_v51  ;;  %v785_v10 = vpop.permute.xlu0 %784  ;;  %v824_v16 = vmul.f32 %v2366_v31, %v796_v52  ;;  %v825_v12 = vmul.f32 %v2369_v8, %v800_v14  ;;  %v776_v25 = vadd.f32 %v768_v19, %v742_v38  ;;  %v910_v34 = vmul.f32 %v2382_v24, %v885_v60  ;;  %v2745_v52 = vld [vmem:[#allocation22_spill] sm:$0xff] }
 0x24f   : > { %v681_v15 = vadd.f32 %v673_v6, %v622_v22  ;;  %v682_v17 = vadd.f32 %v674_v40, %v623_v3  ;;  %v793_v2 = vpop.permute.xlu1 %792  ;;  %v777_v30 = vadd.f32 %v769_v41, %v743_v54  ;;  %v911_v9 = vmul.f32 %v2385_v28, %v881_v57 }
 0x250   : > { %v797_v7 = vsel %vm642_vm5, %v785_v10, %v793_v2  ;;  %v801_v42 = vsel %vm642_vm5, %v793_v2, %v785_v10  ;;  %v944_v61 = vmul.f32 %v2372_v26, %v2743_v59  ;;  %v946_v48 = vmul.f32 %v2372_v26, %v2745_v52 }
 0x251   : > { %v740_v43 = vadd.f32 %v732_v45, %v681_v15  ;;  %v741_v13 = vadd.f32 %v733_v11, %v682_v17  ;;  %1159 = vmatmul.mubr.f32.gmra.mrb[2].mxu1 %v1044_v39  ;;  %v826_v21 = vmul.f32 %v2366_v31, %v797_v7  ;;  %v827_v47 = vmul.f32 %v2369_v8, %v801_v42 }
 0x252   : > { %v870_v1 = vpop.permute.xlu0 %869  ;;  %v945_v31 = vmul.f32 %v2375_v33, %v2744_v55  ;;  %v947_v10 = vmul.f32 %v2375_v33, %v2746_v53 }
 0x253   : > { %v774_v45 = vadd.f32 %v2524_v36, %v740_v43  ;;  %v775_v37 = vadd.f32 %v2528_v27, %v741_v13  ;;  %v969_v0 = vpop.permute.xlu1 %968  ;;  %v834_v8 = vadd.f32 %v826_v21, %v776_v25  ;;  %v835_v62 = vadd.f32 %v827_v47, %v777_v30 }
 0x255   : > { %v832_v58 = vadd.f32 %v824_v16, %v774_v45  ;;  %v833_v44 = vadd.f32 %v825_v12, %v775_v37 }
 0x256   : > { %v961_v36 = vpop.permute.xlu0 %960 }
 0x257   : > { %v918_v51 = vadd.f32 %v910_v34, %v832_v58  ;;  %v919_v27 = vadd.f32 %v911_v9, %v833_v44  ;;  %v974_v49 = vsel %vm642_vm5, %v961_v36, %v969_v0  ;;  %v978_v20 = vsel %vm642_vm5, %v969_v0, %v961_v36  ;;  %v878_v50 = vpop.permute.xlu1 %877  ;;  %v1520_v0 = vld [vmem:[%s1965_s1] sm:$0xff]  ;;  %v1521_v9 = vld [vmem:[%s1965_s1 + $0x8] sm:$0xff] }
 0x258   : > { %v1002_v32 = vmul.f32 %v2471_v29, %v974_v49  ;;  %v1003_v63 = vmul.f32 %v2448_v23, %v978_v20  ;;  %v882_v22 = vsel %vm548_vm4, %v870_v1, %v878_v50  ;;  %v886_v3 = vsel %vm548_vm4, %v878_v50, %v870_v1  ;;  %v1523_v49 = vld [vmem:[%s1965_s1 + $0x18] sm:$0xff] }
 0x259   : > { %v952_v6 = vadd.f32 %v944_v61, %v918_v51  ;;  %v953_v40 = vadd.f32 %v945_v31, %v919_v27  ;;  %v912_v11 = vmul.f32 %v2382_v24, %v886_v3  ;;  %v913_v18 = vmul.f32 %v2385_v28, %v882_v22 }
 0x25a   : > { %v963_v14 = vpop.permute.xlu0 %962 }
 0x25b   : > { %v1010_v15 = vadd.f32 %v1002_v32, %v952_v6  ;;  %v1011_v17 = vadd.f32 %v1003_v63, %v953_v40  ;;  %v920_v2 = vadd.f32 %v912_v11, %v834_v8  ;;  %v921_v39 = vadd.f32 %v913_v18, %v835_v62  ;;  %v971_v38 = vpop.permute.xlu1 %970  ;;  %v1522_v62 = vld [vmem:[%s1965_s1 + $0x10] sm:$0xff] }
 0x25c   : > { %v975_v54 = vsel %vm642_vm5, %v963_v14, %v971_v38  ;;  %v979_v24 = vsel %vm642_vm5, %v971_v38, %v963_v14 }
 0x25d   : > { %v954_v7 = vadd.f32 %v946_v48, %v920_v2  ;;  %v955_v28 = vadd.f32 %v947_v10, %v921_v39  ;;  %v1004_v42 = vmul.f32 %v2471_v29, %v975_v54  ;;  %v1005_v26 = vmul.f32 %v2448_v23, %v979_v24 }
 0x25e   : > { %v1031_v33 = vadd.f32 %v2474_v5, %v1011_v17  ;;  %v1030_v43 = vadd.f32 %v2498_v4, %v1010_v15 }
 0x25f   : > { %v1012_v13 = vadd.f32 %v1004_v42, %v954_v7  ;;  %v1013_v56 = vadd.f32 %v1005_v26, %v955_v28 }
 0x260   : > { %v1039_v19 = vmax.f32 %v1031_v33, 0.0  ;;  %v1038_v46 = vmax.f32 %v1030_v43, 0.0 }
 0x261   : > { %v1033_v41 = vadd.f32 %v2474_v5, %v1013_v56  ;;  %v1032_v57 = vadd.f32 %v2498_v4, %v1012_v13  ;;  %v1315_v5 = vld [vmem:[%s2691_s6] ss:$0 sm:$0xff] }
 0x262   : > { %v1047_v35 = vmin.f32 %v1039_v19, 6.0  ;;  %v1046_v60 = vmin.f32 %v1038_v46, 6.0 }
 0x263   : > { %v1041_v21 = vmax.f32 %v1033_v41, 0.0  ;;  %v1040_v47 = vmax.f32 %v1032_v57, 0.0 }
 0x264   : > { %1163 = vmatprep.mubr.f32.mxu1 %v1047_v35 }
 0x265   : > { %1164 = vmatmul.mubr.f32.gmra.mrb[4].mxu1 %v1046_v60  ;;  %v1049_v23 = vmin.f32 %v1041_v21, 6.0  ;;  %v1048_v29 = vmin.f32 %v1040_v47, 6.0 }
 0x267   : > { %1168 = vmatprep.mubr.f32.mxu1 %v1049_v23 }
 0x269   : > { %1169 = vmatmul.mubr.f32.gmra.mrb[6].mxu1 %v1048_v29 }
 0x320   : > { %v1358_v1 = vpop.f32.mrb[0].mxu1 }
 0x321   : > { %v1359_v16 = vpop.f32.mrb[1].mxu1 }
 0x322   : > { %v1360_v4 = vadd.f32 %v1359_v16, %v1358_v1 }
 0x324   : > { %v1156_v12 = vadd.f32 %v1360_v4, %v1315_v5  ;;  %v1361_v45 = vpop.f32.mrb[2].mxu1 }
 0x325   : > { %v1362_v37 = vpop.f32.mrb[3].mxu1 }
 0x326   : > { %v1174_v25 = vadd.f32 %v1520_v0, %v1156_v12  ;;  %v1363_v30 = vadd.f32 %v1362_v37, %v1361_v45 }
 0x328   : > { %1178 = vst [vmem:[%s341_s16] sm:$0xff] %v1174_v25  ;;  %v1161_v34 = vadd.f32 %v1363_v30, %v1315_v5 }
 0x32a   : > { %v1175_v58 = vadd.f32 %v1521_v9, %v1161_v34 }
 0x32c   : > { %1179 = vst [vmem:[%s341_s16 + $0x8] sm:$0xff] %v1175_v58 }
 0x338   : > { %v1364_v44 = vpop.f32.mrb[4].mxu1 }
 0x339   : > { %v1365_v59 = vpop.f32.mrb[5].mxu1 }
 0x33a   : > { %v1366_v61 = vadd.f32 %v1365_v59, %v1364_v44 }
 0x33c   : > { %v1166_v55 = vadd.f32 %v1366_v61, %v1315_v5  ;;  %v1367_v31 = vpop.f32.mrb[6].mxu1 }
 0x33d   : > { %v1368_v8 = vpop.f32.mrb[7].mxu1 }
 0x33e   : > { %v1176_v36 = vadd.f32 %v1522_v62, %v1166_v55  ;;  %v1369_v51 = vadd.f32 %v1368_v8, %v1367_v31 }
 0x340   : > { %1180 = vst [vmem:[%s341_s16 + $0x10] sm:$0xff] %v1176_v36  ;;  %v1171_v27 = vadd.f32 %v1369_v51, %v1315_v5 }
 0x342   : > { %v1177_v20 = vadd.f32 %v1523_v49, %v1171_v27 }
 0x344   : > { %1181 = vst [vmem:[%s341_s16 + $0x18] sm:$0xff] %v1177_v20 }
 0x345   : > { %1651 = shalt.err (!%p1648_p12)
}
 0x346   : > { %s1652_s1 = scalar_lea.hbm %s2641_s22, 512  ;;  %s1656_s8 = scalar_lea.hbm %s2692_s7, 2048 }
 0x347   : > { %p1653_p0 = scmp.ne.s32.totalorder %s2641_s22, %s1652_s1  ;;  %p1657_p11 = scmp.lt.u32.totalorder %s2641_s22, %s2692_s7 }
 0x348   : > { %p1658_p1 = scmp.lt.u32.totalorder %s1656_s8, %s1652_s1  ;;  %p1660_p4 = scmp.lt.u32.totalorder %s1652_s1, %s2641_s22 }
 0x349   : > { %p1654_p5 = pnand %p1653_p0, %p1908_p8 }
 0x34a   : > { %p1659_p2 = por %p1658_p1, %p1657_p11 }
 0x34b   : > { %p1655_p10 = pneg %p1654_p5 }
 0x34c   : > { %p1661_p6 = por %p1660_p4, %p1659_p2 }
 0x34e   : > { %p1662_p13 = pnand %p1661_p6, %p1655_p10 }
 0x350   : > { %1665 = shalt.err (!%p1662_p13)
}
 0x351   : > { %s1726_s12 = smov 128   ;;  %s1727_s19 = smov 8  }
 0x352   : > { %1448 = dma.vmem_to_hbm [thread:$0]  (%p1908_p8), %s2636_s11, 512, %s2641_s22, %s1183_s30, %s1726_s12, %s1726_s12, %s1727_s19  }
 0x353 PF: > { %s2747_s21 = sld [smem:[#allocation15_spill]]  ;;  %p1475_p3 = scmp.ge.s32.totalorder %s1712_s27, 2 }
 0x354   : > { %s1212_s9 = sand.u32 1, %s1700_s24  }
 0x355   : > { %s1213_s28 = scalar_lea.sflag [#allocation4], %s1212_s9 }
 0x359   : > { %p2748_p7 = scmp.ne.s32.totalorder %s2747_s21, 0 }
 0x35b   : > { %p1465_p9 = pnand %p1475_p3, %p2748_p7 }
 0x35d   : > { %1695 = dma.done.wait (!%p1465_p9), %s1213_s28, 512  }
 0x35e   : > { %1697 = vsyncadd (!%p1465_p9), %s1213_s28, 4294966784  ;;  %p22_p12 = scmp.ge.s32.totalorder %s1873_s18, 6   ;;  %s2749_s24 = smov %s1704_s25 }
 0x35f   : > { %s2750_s25 = smov %s1708_s26  ;;  %s2751_s26 = smov %s1904_s13 }
 0x360   : > { %s2752_s27 = smov %s1873_s18  ;;  %24 = sbr.rel (!%p22_p12) target bundleno = 9 (0x9), region = 105 }
 0x367   :  { %1218 = vsyncpa [#allocation3], 1 }
 0x368   :  { %1220 = vsyncpa [#allocation3 + $0x1], 1 }
 0x369   :  { %1221 = vsyncpa [#allocation6], 1 }
 0x36a   :  { %1222 = vsyncpa [#allocation9], 1 }
 0x36b   :  { %1223 = vsyncpa [#allocation4], 1 }
 0x36c   :  { %1225 = vsyncpa [#allocation4 + $0x1], 1 }

</bundles_post_ra>
